<compile_context>
chip_gen: v7x
topology: tpu7x:2x2x1
jax: 0.10.0
libtpu: 0.0.40
codegen_flags: <defaults>
</compile_context>

<pallas_src>
import functools
import math

import numpy as np
import jax
import jax.numpy as jnp
from jax.experimental import pallas as pl
from jax.experimental.pallas import tpu as pltpu

# ----------------------------- configuration -------------------------------
CFG = dict(
    input_dim=12,        # per-token feature dim
    seq_end=4,           # split: sequence features vs. histone features
    dense_dim=16,        # PrepNet hidden width  (d_model = 2*dense_dim = 32)
    dense_num_layers=2,
    nhead=4,
    attn_hidden_dim=64,  # transformer FFN width
    attn_num_layers=2,
    dropout=0.1,         # identity at inference
)
BATCH, SEQ_LEN = 2, 8
LANES = 128


# ---------------------------- slab layout (static) --------------------------
def _pad8(r):
    return ((r + 7) // 8) * 8


def make_layout(cfg, B, S):
    """name -> (row_offset, rows, cols) inside the packed (total_rows, 128) f32 slab.
    Every tensor starts on an 8-row boundary so all kernel slices are tile-aligned."""
    D = 2 * cfg["dense_dim"]
    FFD = cfg["attn_hidden_dim"]
    F = cfg["input_dim"]
    L = cfg["attn_num_layers"]
    T = B * S
    entries = [
        ("prep_w1", F, D), ("prep_b1", 1, D),
        ("prep_w2", D, D), ("prep_b2", 1, D),
        ("merge_w", D, D), ("merge_b", 1, D),
    ]
    for l in range(L):
        entries += [
            (f"wqkv_{l}", D, 3 * D), (f"bqkv_{l}", 1, 3 * D),
            (f"wo_{l}", D, D), (f"bo_{l}", 1, D),
            (f"ln1g_{l}", 1, D), (f"ln1b_{l}", 1, D),
            (f"ff1w_{l}", D, FFD), (f"ff1b_{l}", 1, FFD),
            (f"ff2w_{l}", FFD, D), (f"ff2b_{l}", 1, D),
            (f"ln2g_{l}", 1, D), (f"ln2b_{l}", 1, D),
        ]
    entries += [
        ("fc1_w", D, 16), ("fc1_b", 1, 16),
        ("out_w", 16, 1), ("out_b", 1, 1),
        ("attn_mask", T, T),   # 0 in-batch, -1e30 cross-batch (added BEFORE max/softmax)
        ("sel", B, T),         # segment-sum selector for the final per-batch reduction
    ]
    layout, off = {}, 0
    for name, r, c in entries:
        assert c <= LANES
        layout[name] = (off, r, c)
        off += _pad8(r)
    return layout, off


# ------------------------------ fused kernel -------------------------------
def _unadon_kernel(x_ref, p_ref, o_ref, *, layout, B, S, D, H, L):
    T = B * S
    dh = D // H

    def get(name):
        off, r, c = layout[name]
        return p_ref[off:off + r, :c]          # static, tile-aligned VMEM slice

    def affine(a, w, b):
        return jnp.dot(a, w, preferred_element_type=jnp.float32) + b

    def layernorm(y, g, b):                    # eps = 1e-5 (PyTorch default)
        mu = jnp.mean(y, axis=-1, keepdims=True)
        var = jnp.mean(jnp.square(y - mu), axis=-1, keepdims=True)
        return (y - mu) * jax.lax.rsqrt(var + 1e-5) * g + b

    x = x_ref[...]                                                    # (T, input_dim)

    # PrepNet (seqNet || histNet via block-diagonal weights) -> implicit concat -> FC_merge
    hid = jnp.maximum(affine(x, get("prep_w1"), get("prep_b1")), 0.0)   # dropout = identity
    hid = jnp.maximum(affine(hid, get("prep_w2"), get("prep_b2")), 0.0)
    out = affine(hid, get("merge_w"), get("merge_b"))                 # (T, D)

    attn_mask = get("attn_mask")                                      # (T, T)

    # Transformer encoder (post-norm, ReLU FFN).  The attention weights returned by the
    # custom PyTorch encoder are unused downstream, so they are not emitted.
    # TODO(synk): custom TransformerEncoder/Layer source not in the snippet; the two
    # torch.transpose(0,1) calls are assumed to cancel (attention over the sequence axis).
    for l in range(L):
        qkv = affine(out, get(f"wqkv_{l}"), get(f"bqkv_{l}"))         # (T, 3D), one matmul
        ctxs = []
        for h in range(H):
            q = qkv[:, h * dh:(h + 1) * dh]                           # 1/sqrt(dh) folded in
            k = qkv[:, D + h * dh:D + (h + 1) * dh]
            v = qkv[:, 2 * D + h * dh:2 * D + (h + 1) * dh]
            s = jnp.dot(q, k.T, preferred_element_type=jnp.float32)   # (T, T), whole batch
            s = s + attn_mask                                         # mask BEFORE max/softmax
            s = s - jnp.max(s, axis=-1, keepdims=True)
            p = jnp.exp(s)
            p = p * pl.reciprocal(jnp.sum(p, axis=-1, keepdims=True), approx=True)
            ctxs.append(jnp.dot(p, v, preferred_element_type=jnp.float32))   # (T, dh)
        ctx = jnp.concatenate(ctxs, axis=-1)                          # (T, D) lane concat
        attn = affine(ctx, get(f"wo_{l}"), get(f"bo_{l}"))            # single out-projection
        y = layernorm(out + attn, get(f"ln1g_{l}"), get(f"ln1b_{l}"))
        ff = jnp.maximum(affine(y, get(f"ff1w_{l}"), get(f"ff1b_{l}")), 0.0)
        ff = affine(ff, get(f"ff2w_{l}"), get(f"ff2b_{l}"))
        out = layernorm(y + ff, get(f"ln2g_{l}"), get(f"ln2b_{l}"))

    # Head: FC1 -> ReLU -> output -> Flatten/Tanh -> per-batch sum over the sequence.
    # (domain_clf output is not used by forward()'s return value, so it is skipped.)
    z = jnp.maximum(affine(out, get("fc1_w"), get("fc1_b")), 0.0)     # (T, 16)
    t = jnp.tanh(affine(z, get("out_w"), get("out_b")))               # (T, 1)
    o_ref[...] = jnp.dot(get("sel"), t, preferred_element_type=jnp.float32)   # (B, 1)


# ------------------------------ wrapper -------------------------------------
def unadon_forward(x, slab, cfg):
    B, S, F = x.shape
    D = 2 * cfg["dense_dim"]
    H = cfg["nhead"]
    L = cfg["attn_num_layers"]
    T = B * S
    layout, total_rows = make_layout(cfg, B, S)
    assert slab.shape == (total_rows, LANES)

    return pl.pallas_call(
        functools.partial(_unadon_kernel, layout=layout, B=B, S=S, D=D, H=H, L=L),
        out_shape=jax.ShapeDtypeStruct((B, 1), jnp.float32),
        grid=(1,),
        in_specs=[pl.BlockSpec((T, F), lambda i: (0, 0)),
                  pl.BlockSpec((total_rows, LANES), lambda i: (0, 0))],
        out_specs=pl.BlockSpec((B, 1), lambda i: (0, 0)),
        compiler_params=pltpu.CompilerParams(
            dimension_semantics=("arbitrary",)),   # single core: total work is a few kFLOPs
    )(x.reshape(T, F), slab)


# ----------------------------- parameter init ------------------------------
def init_params(key, cfg):
    dd = cfg["dense_dim"]
    D = 2 * dd
    keys = iter(jax.random.split(key, 64))

    def lin(fan_in, fan_out):
        k1, k2 = jax.random.split(next(keys))
        w = jax.random.normal(k1, (fan_in, fan_out), jnp.float32) / math.sqrt(fan_in)
        b = jax.random.normal(k2, (1, fan_out), jnp.float32) * 0.01
        return w, b

    # TODO(synk): PrepNet / DomainClassifier source not included in the snippet;
    # PrepNet assumed to be [Linear -> ReLU -> Dropout] x dense_num_layers (out dim = dense_dim),
    # DomainClassifier(16) assumed Linear(16, 2) — its output is unused by forward()'s return,
    # so it is not evaluated in the fused kernel.
    def prepnet(in_dim):
        dims = [in_dim] + [dd] * cfg["dense_num_layers"]
        return [lin(dims[i], dims[i + 1]) for i in range(cfg["dense_num_layers"])]

    p = {
        "seqNet": prepnet(cfg["seq_end"]),                     # input_dim > seq_end branch
        "histNet": prepnet(cfg["input_dim"] - cfg["seq_end"]),
        "FC_merge": lin(D, D),
        "FC1": lin(D, 16),
        "domain_clf": lin(16, 2),                              # initialized, never used
        "output": lin(16, 1),
    }
    layers = []
    for _ in range(cfg["attn_num_layers"]):
        layers.append({
            "wq": lin(D, D), "wk": lin(D, D), "wv": lin(D, D), "wo": lin(D, D),
            "ln1": (jnp.ones((1, D), jnp.float32), jnp.zeros((1, D), jnp.float32)),
            "ff1": lin(D, cfg["attn_hidden_dim"]),
            "ff2": lin(cfg["attn_hidden_dim"], D),
            "ln2": (jnp.ones((1, D), jnp.float32), jnp.zeros((1, D), jnp.float32)),
        })
    p["layers"] = layers
    return p


def _block_diag(a, b):
    a = np.asarray(a, np.float32)
    b = np.asarray(b, np.float32)
    ra, ca = a.shape
    rb, cb = b.shape
    out = np.zeros((ra + rb, ca + cb), np.float32)
    out[:ra, :ca] = a
    out[ra:, ca:] = b
    return out


def pack_params(p, cfg, B, S):
    """Repack module params into ONE lane-dense (total_rows, 128) f32 slab (done once,
    outside the kernel)."""
    dd = cfg["dense_dim"]
    D = 2 * dd
    H = cfg["nhead"]
    dh = D // H
    scale = 1.0 / math.sqrt(dh)
    T = B * S
    assert cfg["dense_num_layers"] == 2, "fused kernel packs exactly 2 PrepNet layers"

    layout, total_rows = make_layout(cfg, B, S)
    slab = np.zeros((total_rows, LANES), np.float32)

    def put(name, arr):
        off, r, c = layout[name]
        a = np.asarray(arr, np.float32).reshape(r, c)
        slab[off:off + r, :c] = a

    # seqNet || histNet as block-diagonal weights: output cols [0:dd]=seq, [dd:2dd]=hist,
    # which *is* torch.cat((seq_out, hist_out), dim=-1).
    (ws1, bs1), (ws2, bs2) = p["seqNet"]
    (wh1, bh1), (wh2, bh2) = p["histNet"]
    put("prep_w1", _block_diag(ws1, wh1))
    put("prep_b1", np.concatenate([np.asarray(bs1), np.asarray(bh1)], axis=1))
    put("prep_w2", _block_diag(ws2, wh2))
    put("prep_b2", np.concatenate([np.asarray(bs2), np.asarray(bh2)], axis=1))
    put("merge_w", p["FC_merge"][0])
    put("merge_b", p["FC_merge"][1])

    for l, lyr in enumerate(p["layers"]):
        wq, bq = lyr["wq"]
        wk, bk = lyr["wk"]
        wv, bv = lyr["wv"]
        # Fused QKV weight [Wq*scale | Wk | Wv]; 1/sqrt(dh) folded into the Q projection.
        put(f"wqkv_{l}", np.concatenate(
            [np.asarray(wq) * scale, np.asarray(wk), np.asarray(wv)], axis=1))
        put(f"bqkv_{l}", np.concatenate(
            [np.asarray(bq) * scale, np.asarray(bk), np.asarray(bv)], axis=1))
        wo, bo = lyr["wo"]
        put(f"wo_{l}", wo)            # un-split: ctx lane-concat order matches Wo rows
        put(f"bo_{l}", bo)
        g, b = lyr["ln1"]; put(f"ln1g_{l}", g); put(f"ln1b_{l}", b)
        w, b = lyr["ff1"]; put(f"ff1w_{l}", w); put(f"ff1b_{l}", b)
        w, b = lyr["ff2"]; put(f"ff2w_{l}", w); put(f"ff2b_{l}", b)
        g, b = lyr["ln2"]; put(f"ln2g_{l}", g); put(f"ln2b_{l}", b)

    put("fc1_w", p["FC1"][0])
    put("fc1_b", p["FC1"][1])
    put("out_w", p["output"][0])
    put("out_b", p["output"][1])

    # Block-diagonal attention mask over the flattened batch: 0 within a batch's S-token
    # block, -1e30 across batches (added BEFORE the max-subtract, so each batch's softmax
    # normalization is unchanged and cross-batch terms exp to exactly 0).
    tok_b = np.arange(T) // S
    mask = np.where(tok_b[:, None] == tok_b[None, :], 0.0, -1e30).astype(np.float32)
    put("attn_mask", mask)
    # Segment-sum selector for the final per-batch sum over the sequence.
    sel = (tok_b[None, :] == np.arange(B)[:, None]).astype(np.float32)
    put("sel", sel)

    return jnp.asarray(slab)


# --------------------------------- main -------------------------------------
if __name__ == "__main__":
    key = jax.random.PRNGKey(0)
    k_x, k_p = jax.random.split(key)
    x = jax.random.normal(k_x, (BATCH, SEQ_LEN, CFG["input_dim"]), jnp.float32)
    params = init_params(k_p, CFG)
    slab = pack_params(params, CFG, BATCH, SEQ_LEN)

    fwd = jax.jit(lambda xx, pp: unadon_forward(xx, pp, CFG))
    y = fwd(x, slab)
    jax.block_until_ready(y)
    assert y.shape == (BATCH, 1) and y.dtype == jnp.float32
    print("KERNEL_OK")
</pallas_src>

<mosaic_0001>
module attributes {stable_mosaic.version = 11 : i64} {
  func.func @_unadon_kernel(%arg0: i32, %arg1: memref<16x12xf32, #tpu.memory_space<vmem>>, %arg2: memref<640x128xf32, #tpu.memory_space<vmem>>, %arg3: memref<2x1xf32, #tpu.memory_space<vmem>>) attributes {dimension_semantics = [#tpu.dimension_semantics<arbitrary>], iteration_bounds = array<i64: 1>, scalar_prefetch = 0 : i64, scratch_operands = 0 : i64, tpu.core_type = #tpu.core_type<tc>, window_params = [{pipeline_mode = #tpu.pipeline_mode<synchronous>, transform_indices = @transform_0, window_bounds = array<i64: 16, 12>}, {pipeline_mode = #tpu.pipeline_mode<synchronous>, transform_indices = @transform_1, window_bounds = array<i64: 640, 128>}, {pipeline_mode = #tpu.pipeline_mode<synchronous>, transform_indices = @transform_2, window_bounds = array<i64: 2, 1>}]} {
    %c0 = arith.constant 0 : index
    %c0_0 = arith.constant 0 : index
    %0 = vector.load %arg1[%c0, %c0_0] : memref<16x12xf32, #tpu.memory_space<vmem>>, vector<16x12xf32>
    %c0_1 = arith.constant 0 : index
    %c0_2 = arith.constant 0 : index
    %1 = vector.load %arg2[%c0_1, %c0_2] : memref<640x128xf32, #tpu.memory_space<vmem>>, vector<12x32xf32>
    %c16 = arith.constant 16 : index
    %c0_3 = arith.constant 0 : index
    %2 = vector.load %arg2[%c16, %c0_3] : memref<640x128xf32, #tpu.memory_space<vmem>>, vector<1x32xf32>
    %cst = arith.constant dense<0.000000e+00> : vector<16x32xf32>
    %3 = tpu.matmul %0, %1, %cst {dimension_numbers = #tpu.dot_dimension_numbers<[1], [0], [0], [1], [0, 0, 1, 1], [], []>} : vector<16x12xf32>, vector<12x32xf32>, vector<16x32xf32> -> vector<16x32xf32>
    %4 = vector.broadcast %2 : vector<1x32xf32> to vector<16x32xf32>
    %5 = arith.addf %3, %4 : vector<16x32xf32>
    %cst_4 = arith.constant 0.000000e+00 : f32
    %6 = vector.broadcast %cst_4 : f32 to vector<16x32xf32>
    %7 = arith.maximumf %5, %6 : vector<16x32xf32>
    %c24 = arith.constant 24 : index
    %c0_5 = arith.constant 0 : index
    %8 = vector.load %arg2[%c24, %c0_5] : memref<640x128xf32, #tpu.memory_space<vmem>>, vector<32x32xf32>
    %c56 = arith.constant 56 : index
    %c0_6 = arith.constant 0 : index
    %9 = vector.load %arg2[%c56, %c0_6] : memref<640x128xf32, #tpu.memory_space<vmem>>, vector<1x32xf32>
    %cst_7 = arith.constant dense<0.000000e+00> : vector<16x32xf32>
    %10 = tpu.matmul %7, %8, %cst_7 {dimension_numbers = #tpu.dot_dimension_numbers<[1], [0], [0], [1], [0, 0, 1, 1], [], []>} : vector<16x32xf32>, vector<32x32xf32>, vector<16x32xf32> -> vector<16x32xf32>
    %11 = vector.broadcast %9 : vector<1x32xf32> to vector<16x32xf32>
    %12 = arith.addf %10, %11 : vector<16x32xf32>
    %cst_8 = arith.constant 0.000000e+00 : f32
    %13 = vector.broadcast %cst_8 : f32 to vector<16x32xf32>
    %14 = arith.maximumf %12, %13 : vector<16x32xf32>
    %c64 = arith.constant 64 : index
    %c0_9 = arith.constant 0 : index
    %15 = vector.load %arg2[%c64, %c0_9] : memref<640x128xf32, #tpu.memory_space<vmem>>, vector<32x32xf32>
    %c96 = arith.constant 96 : index
    %c0_10 = arith.constant 0 : index
    %16 = vector.load %arg2[%c96, %c0_10] : memref<640x128xf32, #tpu.memory_space<vmem>>, vector<1x32xf32>
    %cst_11 = arith.constant dense<0.000000e+00> : vector<16x32xf32>
    %17 = tpu.matmul %14, %15, %cst_11 {dimension_numbers = #tpu.dot_dimension_numbers<[1], [0], [0], [1], [0, 0, 1, 1], [], []>} : vector<16x32xf32>, vector<32x32xf32>, vector<16x32xf32> -> vector<16x32xf32>
    %18 = vector.broadcast %16 : vector<1x32xf32> to vector<16x32xf32>
    %19 = arith.addf %17, %18 : vector<16x32xf32>
    %c616 = arith.constant 616 : index
    %c0_12 = arith.constant 0 : index
    %20 = vector.load %arg2[%c616, %c0_12] : memref<640x128xf32, #tpu.memory_space<vmem>>, vector<16x16xf32>
    %c104 = arith.constant 104 : index
    %c0_13 = arith.constant 0 : index
    %21 = vector.load %arg2[%c104, %c0_13] : memref<640x128xf32, #tpu.memory_space<vmem>>, vector<32x96xf32>
    %c136 = arith.constant 136 : index
    %c0_14 = arith.constant 0 : index
    %22 = vector.load %arg2[%c136, %c0_14] : memref<640x128xf32, #tpu.memory_space<vmem>>, vector<1x96xf32>
    %cst_15 = arith.constant dense<0.000000e+00> : vector<16x96xf32>
    %23 = tpu.matmul %19, %21, %cst_15 {dimension_numbers = #tpu.dot_dimension_numbers<[1], [0], [0], [1], [0, 0, 1, 1], [], []>} : vector<16x32xf32>, vector<32x96xf32>, vector<16x96xf32> -> vector<16x96xf32>
    %24 = vector.broadcast %22 : vector<1x96xf32> to vector<16x96xf32>
    %25 = arith.addf %23, %24 : vector<16x96xf32>
    %26 = vector.extract_strided_slice %25 {offsets = [0, 0], sizes = [16, 8], strides = [1, 1]} : vector<16x96xf32> to vector<16x8xf32>
    %27 = vector.extract_strided_slice %25 {offsets = [0, 32], sizes = [16, 8], strides = [1, 1]} : vector<16x96xf32> to vector<16x8xf32>
    %28 = vector.extract_strided_slice %25 {offsets = [0, 64], sizes = [16, 8], strides = [1, 1]} : vector<16x96xf32> to vector<16x8xf32>
    %29 = tpu.transpose %27, [1, 0] : vector<16x8xf32> -> vector<8x16xf32>
    %cst_16 = arith.constant dense<0.000000e+00> : vector<16x16xf32>
    %30 = tpu.matmul %26, %29, %cst_16 {dimension_numbers = #tpu.dot_dimension_numbers<[1], [0], [0], [1], [0, 0, 1, 1], [], []>} : vector<16x8xf32>, vector<8x16xf32>, vector<16x16xf32> -> vector<16x16xf32>
    %31 = arith.addf %30, %20 : vector<16x16xf32>
    %cst_17 = arith.constant dense<0xFF800000> : vector<16xf32>
    %32 = vector.multi_reduction <maximumf>, %31, %cst_17 [1] : vector<16x16xf32> to vector<16xf32>
    %33 = vector.shape_cast %32 : vector<16xf32> to vector<16x1xf32>
    %34 = vector.broadcast %33 : vector<16x1xf32> to vector<16x16xf32>
    %35 = arith.subf %31, %34 : vector<16x16xf32>
    %36 = math.exp %35 : vector<16x16xf32>
    %cst_18 = arith.constant dense<0.000000e+00> : vector<16xf32>
    %37 = vector.multi_reduction <add>, %36, %cst_18 [1] : vector<16x16xf32> to vector<16xf32>
    %38 = vector.shape_cast %37 : vector<16xf32> to vector<16x1xf32>
    %39 = tpu.reciprocal %38 {approx = true} : vector<16x1xf32> -> vector<16x1xf32>
    %40 = vector.broadcast %39 : vector<16x1xf32> to vector<16x16xf32>
    %41 = arith.mulf %36, %40 : vector<16x16xf32>
    %cst_19 = arith.constant dense<0.000000e+00> : vector<16x8xf32>
    %42 = tpu.matmul %41, %28, %cst_19 {dimension_numbers = #tpu.dot_dimension_numbers<[1], [0], [0], [1], [0, 0, 1, 1], [], []>} : vector<16x16xf32>, vector<16x8xf32>, vector<16x8xf32> -> vector<16x8xf32>
    %43 = vector.extract_strided_slice %25 {offsets = [0, 8], sizes = [16, 8], strides = [1, 1]} : vector<16x96xf32> to vector<16x8xf32>
    %44 = vector.extract_strided_slice %25 {offsets = [0, 40], sizes = [16, 8], strides = [1, 1]} : vector<16x96xf32> to vector<16x8xf32>
    %45 = vector.extract_strided_slice %25 {offsets = [0, 72], sizes = [16, 8], strides = [1, 1]} : vector<16x96xf32> to vector<16x8xf32>
    %46 = tpu.transpose %44, [1, 0] : vector<16x8xf32> -> vector<8x16xf32>
    %cst_20 = arith.constant dense<0.000000e+00> : vector<16x16xf32>
    %47 = tpu.matmul %43, %46, %cst_20 {dimension_numbers = #tpu.dot_dimension_numbers<[1], [0], [0], [1], [0, 0, 1, 1], [], []>} : vector<16x8xf32>, vector<8x16xf32>, vector<16x16xf32> -> vector<16x16xf32>
    %48 = arith.addf %47, %20 : vector<16x16xf32>
    %cst_21 = arith.constant dense<0xFF800000> : vector<16xf32>
    %49 = vector.multi_reduction <maximumf>, %48, %cst_21 [1] : vector<16x16xf32> to vector<16xf32>
    %50 = vector.shape_cast %49 : vector<16xf32> to vector<16x1xf32>
    %51 = vector.broadcast %50 : vector<16x1xf32> to vector<16x16xf32>
    %52 = arith.subf %48, %51 : vector<16x16xf32>
    %53 = math.exp %52 : vector<16x16xf32>
    %cst_22 = arith.constant dense<0.000000e+00> : vector<16xf32>
    %54 = vector.multi_reduction <add>, %53, %cst_22 [1] : vector<16x16xf32> to vector<16xf32>
    %55 = vector.shape_cast %54 : vector<16xf32> to vector<16x1xf32>
    %56 = tpu.reciprocal %55 {approx = true} : vector<16x1xf32> -> vector<16x1xf32>
    %57 = vector.broadcast %56 : vector<16x1xf32> to vector<16x16xf32>
    %58 = arith.mulf %53, %57 : vector<16x16xf32>
    %cst_23 = arith.constant dense<0.000000e+00> : vector<16x8xf32>
    %59 = tpu.matmul %58, %45, %cst_23 {dimension_numbers = #tpu.dot_dimension_numbers<[1], [0], [0], [1], [0, 0, 1, 1], [], []>} : vector<16x16xf32>, vector<16x8xf32>, vector<16x8xf32> -> vector<16x8xf32>
    %60 = vector.extract_strided_slice %25 {offsets = [0, 16], sizes = [16, 8], strides = [1, 1]} : vector<16x96xf32> to vector<16x8xf32>
    %61 = vector.extract_strided_slice %25 {offsets = [0, 48], sizes = [16, 8], strides = [1, 1]} : vector<16x96xf32> to vector<16x8xf32>
    %62 = vector.extract_strided_slice %25 {offsets = [0, 80], sizes = [16, 8], strides = [1, 1]} : vector<16x96xf32> to vector<16x8xf32>
    %63 = tpu.transpose %61, [1, 0] : vector<16x8xf32> -> vector<8x16xf32>
    %cst_24 = arith.constant dense<0.000000e+00> : vector<16x16xf32>
    %64 = tpu.matmul %60, %63, %cst_24 {dimension_numbers = #tpu.dot_dimension_numbers<[1], [0], [0], [1], [0, 0, 1, 1], [], []>} : vector<16x8xf32>, vector<8x16xf32>, vector<16x16xf32> -> vector<16x16xf32>
    %65 = arith.addf %64, %20 : vector<16x16xf32>
    %cst_25 = arith.constant dense<0xFF800000> : vector<16xf32>
    %66 = vector.multi_reduction <maximumf>, %65, %cst_25 [1] : vector<16x16xf32> to vector<16xf32>
    %67 = vector.shape_cast %66 : vector<16xf32> to vector<16x1xf32>
    %68 = vector.broadcast %67 : vector<16x1xf32> to vector<16x16xf32>
    %69 = arith.subf %65, %68 : vector<16x16xf32>
    %70 = math.exp %69 : vector<16x16xf32>
    %cst_26 = arith.constant dense<0.000000e+00> : vector<16xf32>
    %71 = vector.multi_reduction <add>, %70, %cst_26 [1] : vector<16x16xf32> to vector<16xf32>
    %72 = vector.shape_cast %71 : vector<16xf32> to vector<16x1xf32>
    %73 = tpu.reciprocal %72 {approx = true} : vector<16x1xf32> -> vector<16x1xf32>
    %74 = vector.broadcast %73 : vector<16x1xf32> to vector<16x16xf32>
    %75 = arith.mulf %70, %74 : vector<16x16xf32>
    %cst_27 = arith.constant dense<0.000000e+00> : vector<16x8xf32>
    %76 = tpu.matmul %75, %62, %cst_27 {dimension_numbers = #tpu.dot_dimension_numbers<[1], [0], [0], [1], [0, 0, 1, 1], [], []>} : vector<16x16xf32>, vector<16x8xf32>, vector<16x8xf32> -> vector<16x8xf32>
    %77 = vector.extract_strided_slice %25 {offsets = [0, 24], sizes = [16, 8], strides = [1, 1]} : vector<16x96xf32> to vector<16x8xf32>
    %78 = vector.extract_strided_slice %25 {offsets = [0, 56], sizes = [16, 8], strides = [1, 1]} : vector<16x96xf32> to vector<16x8xf32>
    %79 = vector.extract_strided_slice %25 {offsets = [0, 88], sizes = [16, 8], strides = [1, 1]} : vector<16x96xf32> to vector<16x8xf32>
    %80 = tpu.transpose %78, [1, 0] : vector<16x8xf32> -> vector<8x16xf32>
    %cst_28 = arith.constant dense<0.000000e+00> : vector<16x16xf32>
    %81 = tpu.matmul %77, %80, %cst_28 {dimension_numbers = #tpu.dot_dimension_numbers<[1], [0], [0], [1], [0, 0, 1, 1], [], []>} : vector<16x8xf32>, vector<8x16xf32>, vector<16x16xf32> -> vector<16x16xf32>
    %82 = arith.addf %81, %20 : vector<16x16xf32>
    %cst_29 = arith.constant dense<0xFF800000> : vector<16xf32>
    %83 = vector.multi_reduction <maximumf>, %82, %cst_29 [1] : vector<16x16xf32> to vector<16xf32>
    %84 = vector.shape_cast %83 : vector<16xf32> to vector<16x1xf32>
    %85 = vector.broadcast %84 : vector<16x1xf32> to vector<16x16xf32>
    %86 = arith.subf %82, %85 : vector<16x16xf32>
    %87 = math.exp %86 : vector<16x16xf32>
    %cst_30 = arith.constant dense<0.000000e+00> : vector<16xf32>
    %88 = vector.multi_reduction <add>, %87, %cst_30 [1] : vector<16x16xf32> to vector<16xf32>
    %89 = vector.shape_cast %88 : vector<16xf32> to vector<16x1xf32>
    %90 = tpu.reciprocal %89 {approx = true} : vector<16x1xf32> -> vector<16x1xf32>
    %91 = vector.broadcast %90 : vector<16x1xf32> to vector<16x16xf32>
    %92 = arith.mulf %87, %91 : vector<16x16xf32>
    %cst_31 = arith.constant dense<0.000000e+00> : vector<16x8xf32>
    %93 = tpu.matmul %92, %79, %cst_31 {dimension_numbers = #tpu.dot_dimension_numbers<[1], [0], [0], [1], [0, 0, 1, 1], [], []>} : vector<16x16xf32>, vector<16x8xf32>, vector<16x8xf32> -> vector<16x8xf32>
    %94 = tpu.concatenate %42, %59, %76, %93 in 1 : vector<16x8xf32>, vector<16x8xf32>, vector<16x8xf32>, vector<16x8xf32> -> vector<16x32xf32>
    %c144 = arith.constant 144 : index
    %c0_32 = arith.constant 0 : index
    %95 = vector.load %arg2[%c144, %c0_32] : memref<640x128xf32, #tpu.memory_space<vmem>>, vector<32x32xf32>
    %c176 = arith.constant 176 : index
    %c0_33 = arith.constant 0 : index
    %96 = vector.load %arg2[%c176, %c0_33] : memref<640x128xf32, #tpu.memory_space<vmem>>, vector<1x32xf32>
    %cst_34 = arith.constant dense<0.000000e+00> : vector<16x32xf32>
    %97 = tpu.matmul %94, %95, %cst_34 {dimension_numbers = #tpu.dot_dimension_numbers<[1], [0], [0], [1], [0, 0, 1, 1], [], []>} : vector<16x32xf32>, vector<32x32xf32>, vector<16x32xf32> -> vector<16x32xf32>
    %98 = vector.broadcast %96 : vector<1x32xf32> to vector<16x32xf32>
    %99 = arith.addf %97, %98 : vector<16x32xf32>
    %100 = arith.addf %19, %99 : vector<16x32xf32>
    %c184 = arith.constant 184 : index
    %c0_35 = arith.constant 0 : index
    %101 = vector.load %arg2[%c184, %c0_35] : memref<640x128xf32, #tpu.memory_space<vmem>>, vector<1x32xf32>
    %c192 = arith.constant 192 : index
    %c0_36 = arith.constant 0 : index
    %102 = vector.load %arg2[%c192, %c0_36] : memref<640x128xf32, #tpu.memory_space<vmem>>, vector<1x32xf32>
    %cst_37 = arith.constant dense<0.000000e+00> : vector<16xf32>
    %103 = vector.multi_reduction <add>, %100, %cst_37 [1] : vector<16x32xf32> to vector<16xf32>
    %104 = vector.shape_cast %103 : vector<16xf32> to vector<16x1xf32>
    %cst_38 = arith.constant 3.200000e+01 : f32
    %105 = vector.broadcast %cst_38 : f32 to vector<16x1xf32>
    %106 = arith.divf %104, %105 : vector<16x1xf32>
    %107 = vector.broadcast %106 : vector<16x1xf32> to vector<16x32xf32>
    %108 = arith.subf %100, %107 : vector<16x32xf32>
    %109 = arith.mulf %108, %108 : vector<16x32xf32>
    %cst_39 = arith.constant dense<0.000000e+00> : vector<16xf32>
    %110 = vector.multi_reduction <add>, %109, %cst_39 [1] : vector<16x32xf32> to vector<16xf32>
    %111 = vector.shape_cast %110 : vector<16xf32> to vector<16x1xf32>
    %cst_40 = arith.constant 3.200000e+01 : f32
    %112 = vector.broadcast %cst_40 : f32 to vector<16x1xf32>
    %113 = arith.divf %111, %112 : vector<16x1xf32>
    %114 = vector.broadcast %106 : vector<16x1xf32> to vector<16x32xf32>
    %115 = arith.subf %100, %114 : vector<16x32xf32>
    %cst_41 = arith.constant 9.99999974E-6 : f32
    %116 = vector.broadcast %cst_41 : f32 to vector<16x1xf32>
    %117 = arith.addf %113, %116 : vector<16x1xf32>
    %118 = math.rsqrt %117 : vector<16x1xf32>
    %119 = vector.broadcast %118 : vector<16x1xf32> to vector<16x32xf32>
    %120 = arith.mulf %115, %119 : vector<16x32xf32>
    %121 = vector.broadcast %101 : vector<1x32xf32> to vector<16x32xf32>
    %122 = arith.mulf %120, %121 : vector<16x32xf32>
    %123 = vector.broadcast %102 : vector<1x32xf32> to vector<16x32xf32>
    %124 = arith.addf %122, %123 : vector<16x32xf32>
    %c200 = arith.constant 200 : index
    %c0_42 = arith.constant 0 : index
    %125 = vector.load %arg2[%c200, %c0_42] : memref<640x128xf32, #tpu.memory_space<vmem>>, vector<32x64xf32>
    %c232 = arith.constant 232 : index
    %c0_43 = arith.constant 0 : index
    %126 = vector.load %arg2[%c232, %c0_43] : memref<640x128xf32, #tpu.memory_space<vmem>>, vector<1x64xf32>
    %cst_44 = arith.constant dense<0.000000e+00> : vector<16x64xf32>
    %127 = tpu.matmul %124, %125, %cst_44 {dimension_numbers = #tpu.dot_dimension_numbers<[1], [0], [0], [1], [0, 0, 1, 1], [], []>} : vector<16x32xf32>, vector<32x64xf32>, vector<16x64xf32> -> vector<16x64xf32>
    %128 = vector.broadcast %126 : vector<1x64xf32> to vector<16x64xf32>
    %129 = arith.addf %127, %128 : vector<16x64xf32>
    %cst_45 = arith.constant 0.000000e+00 : f32
    %130 = vector.broadcast %cst_45 : f32 to vector<16x64xf32>
    %131 = arith.maximumf %129, %130 : vector<16x64xf32>
    %c240 = arith.constant 240 : index
    %c0_46 = arith.constant 0 : index
    %132 = vector.load %arg2[%c240, %c0_46] : memref<640x128xf32, #tpu.memory_space<vmem>>, vector<64x32xf32>
    %c304 = arith.constant 304 : index
    %c0_47 = arith.constant 0 : index
    %133 = vector.load %arg2[%c304, %c0_47] : memref<640x128xf32, #tpu.memory_space<vmem>>, vector<1x32xf32>
    %cst_48 = arith.constant dense<0.000000e+00> : vector<16x32xf32>
    %134 = tpu.matmul %131, %132, %cst_48 {dimension_numbers = #tpu.dot_dimension_numbers<[1], [0], [0], [1], [0, 0, 1, 1], [], []>} : vector<16x64xf32>, vector<64x32xf32>, vector<16x32xf32> -> vector<16x32xf32>
    %135 = vector.broadcast %133 : vector<1x32xf32> to vector<16x32xf32>
    %136 = arith.addf %134, %135 : vector<16x32xf32>
    %137 = arith.addf %124, %136 : vector<16x32xf32>
    %c312 = arith.constant 312 : index
    %c0_49 = arith.constant 0 : index
    %138 = vector.load %arg2[%c312, %c0_49] : memref<640x128xf32, #tpu.memory_space<vmem>>, vector<1x32xf32>
    %c320 = arith.constant 320 : index
    %c0_50 = arith.constant 0 : index
    %139 = vector.load %arg2[%c320, %c0_50] : memref<640x128xf32, #tpu.memory_space<vmem>>, vector<1x32xf32>
    %cst_51 = arith.constant dense<0.000000e+00> : vector<16xf32>
    %140 = vector.multi_reduction <add>, %137, %cst_51 [1] : vector<16x32xf32> to vector<16xf32>
    %141 = vector.shape_cast %140 : vector<16xf32> to vector<16x1xf32>
    %cst_52 = arith.constant 3.200000e+01 : f32
    %142 = vector.broadcast %cst_52 : f32 to vector<16x1xf32>
    %143 = arith.divf %141, %142 : vector<16x1xf32>
    %144 = vector.broadcast %143 : vector<16x1xf32> to vector<16x32xf32>
    %145 = arith.subf %137, %144 : vector<16x32xf32>
    %146 = arith.mulf %145, %145 : vector<16x32xf32>
    %cst_53 = arith.constant dense<0.000000e+00> : vector<16xf32>
    %147 = vector.multi_reduction <add>, %146, %cst_53 [1] : vector<16x32xf32> to vector<16xf32>
    %148 = vector.shape_cast %147 : vector<16xf32> to vector<16x1xf32>
    %cst_54 = arith.constant 3.200000e+01 : f32
    %149 = vector.broadcast %cst_54 : f32 to vector<16x1xf32>
    %150 = arith.divf %148, %149 : vector<16x1xf32>
    %151 = vector.broadcast %143 : vector<16x1xf32> to vector<16x32xf32>
    %152 = arith.subf %137, %151 : vector<16x32xf32>
    %cst_55 = arith.constant 9.99999974E-6 : f32
    %153 = vector.broadcast %cst_55 : f32 to vector<16x1xf32>
    %154 = arith.addf %150, %153 : vector<16x1xf32>
    %155 = math.rsqrt %154 : vector<16x1xf32>
    %156 = vector.broadcast %155 : vector<16x1xf32> to vector<16x32xf32>
    %157 = arith.mulf %152, %156 : vector<16x32xf32>
    %158 = vector.broadcast %138 : vector<1x32xf32> to vector<16x32xf32>
    %159 = arith.mulf %157, %158 : vector<16x32xf32>
    %160 = vector.broadcast %139 : vector<1x32xf32> to vector<16x32xf32>
    %161 = arith.addf %159, %160 : vector<16x32xf32>
    %c328 = arith.constant 328 : index
    %c0_56 = arith.constant 0 : index
    %162 = vector.load %arg2[%c328, %c0_56] : memref<640x128xf32, #tpu.memory_space<vmem>>, vector<32x96xf32>
    %c360 = arith.constant 360 : index
    %c0_57 = arith.constant 0 : index
    %163 = vector.load %arg2[%c360, %c0_57] : memref<640x128xf32, #tpu.memory_space<vmem>>, vector<1x96xf32>
    %cst_58 = arith.constant dense<0.000000e+00> : vector<16x96xf32>
    %164 = tpu.matmul %161, %162, %cst_58 {dimension_numbers = #tpu.dot_dimension_numbers<[1], [0], [0], [1], [0, 0, 1, 1], [], []>} : vector<16x32xf32>, vector<32x96xf32>, vector<16x96xf32> -> vector<16x96xf32>
    %165 = vector.broadcast %163 : vector<1x96xf32> to vector<16x96xf32>
    %166 = arith.addf %164, %165 : vector<16x96xf32>
    %167 = vector.extract_strided_slice %166 {offsets = [0, 0], sizes = [16, 8], strides = [1, 1]} : vector<16x96xf32> to vector<16x8xf32>
    %168 = vector.extract_strided_slice %166 {offsets = [0, 32], sizes = [16, 8], strides = [1, 1]} : vector<16x96xf32> to vector<16x8xf32>
    %169 = vector.extract_strided_slice %166 {offsets = [0, 64], sizes = [16, 8], strides = [1, 1]} : vector<16x96xf32> to vector<16x8xf32>
    %170 = tpu.transpose %168, [1, 0] : vector<16x8xf32> -> vector<8x16xf32>
    %cst_59 = arith.constant dense<0.000000e+00> : vector<16x16xf32>
    %171 = tpu.matmul %167, %170, %cst_59 {dimension_numbers = #tpu.dot_dimension_numbers<[1], [0], [0], [1], [0, 0, 1, 1], [], []>} : vector<16x8xf32>, vector<8x16xf32>, vector<16x16xf32> -> vector<16x16xf32>
    %172 = arith.addf %171, %20 : vector<16x16xf32>
    %cst_60 = arith.constant dense<0xFF800000> : vector<16xf32>
    %173 = vector.multi_reduction <maximumf>, %172, %cst_60 [1] : vector<16x16xf32> to vector<16xf32>
    %174 = vector.shape_cast %173 : vector<16xf32> to vector<16x1xf32>
    %175 = vector.broadcast %174 : vector<16x1xf32> to vector<16x16xf32>
    %176 = arith.subf %172, %175 : vector<16x16xf32>
    %177 = math.exp %176 : vector<16x16xf32>
    %cst_61 = arith.constant dense<0.000000e+00> : vector<16xf32>
    %178 = vector.multi_reduction <add>, %177, %cst_61 [1] : vector<16x16xf32> to vector<16xf32>
    %179 = vector.shape_cast %178 : vector<16xf32> to vector<16x1xf32>
    %180 = tpu.reciprocal %179 {approx = true} : vector<16x1xf32> -> vector<16x1xf32>
    %181 = vector.broadcast %180 : vector<16x1xf32> to vector<16x16xf32>
    %182 = arith.mulf %177, %181 : vector<16x16xf32>
    %cst_62 = arith.constant dense<0.000000e+00> : vector<16x8xf32>
    %183 = tpu.matmul %182, %169, %cst_62 {dimension_numbers = #tpu.dot_dimension_numbers<[1], [0], [0], [1], [0, 0, 1, 1], [], []>} : vector<16x16xf32>, vector<16x8xf32>, vector<16x8xf32> -> vector<16x8xf32>
    %184 = vector.extract_strided_slice %166 {offsets = [0, 8], sizes = [16, 8], strides = [1, 1]} : vector<16x96xf32> to vector<16x8xf32>
    %185 = vector.extract_strided_slice %166 {offsets = [0, 40], sizes = [16, 8], strides = [1, 1]} : vector<16x96xf32> to vector<16x8xf32>
    %186 = vector.extract_strided_slice %166 {offsets = [0, 72], sizes = [16, 8], strides = [1, 1]} : vector<16x96xf32> to vector<16x8xf32>
    %187 = tpu.transpose %185, [1, 0] : vector<16x8xf32> -> vector<8x16xf32>
    %cst_63 = arith.constant dense<0.000000e+00> : vector<16x16xf32>
    %188 = tpu.matmul %184, %187, %cst_63 {dimension_numbers = #tpu.dot_dimension_numbers<[1], [0], [0], [1], [0, 0, 1, 1], [], []>} : vector<16x8xf32>, vector<8x16xf32>, vector<16x16xf32> -> vector<16x16xf32>
    %189 = arith.addf %188, %20 : vector<16x16xf32>
    %cst_64 = arith.constant dense<0xFF800000> : vector<16xf32>
    %190 = vector.multi_reduction <maximumf>, %189, %cst_64 [1] : vector<16x16xf32> to vector<16xf32>
    %191 = vector.shape_cast %190 : vector<16xf32> to vector<16x1xf32>
    %192 = vector.broadcast %191 : vector<16x1xf32> to vector<16x16xf32>
    %193 = arith.subf %189, %192 : vector<16x16xf32>
    %194 = math.exp %193 : vector<16x16xf32>
    %cst_65 = arith.constant dense<0.000000e+00> : vector<16xf32>
    %195 = vector.multi_reduction <add>, %194, %cst_65 [1] : vector<16x16xf32> to vector<16xf32>
    %196 = vector.shape_cast %195 : vector<16xf32> to vector<16x1xf32>
    %197 = tpu.reciprocal %196 {approx = true} : vector<16x1xf32> -> vector<16x1xf32>
    %198 = vector.broadcast %197 : vector<16x1xf32> to vector<16x16xf32>
    %199 = arith.mulf %194, %198 : vector<16x16xf32>
    %cst_66 = arith.constant dense<0.000000e+00> : vector<16x8xf32>
    %200 = tpu.matmul %199, %186, %cst_66 {dimension_numbers = #tpu.dot_dimension_numbers<[1], [0], [0], [1], [0, 0, 1, 1], [], []>} : vector<16x16xf32>, vector<16x8xf32>, vector<16x8xf32> -> vector<16x8xf32>
    %201 = vector.extract_strided_slice %166 {offsets = [0, 16], sizes = [16, 8], strides = [1, 1]} : vector<16x96xf32> to vector<16x8xf32>
    %202 = vector.extract_strided_slice %166 {offsets = [0, 48], sizes = [16, 8], strides = [1, 1]} : vector<16x96xf32> to vector<16x8xf32>
    %203 = vector.extract_strided_slice %166 {offsets = [0, 80], sizes = [16, 8], strides = [1, 1]} : vector<16x96xf32> to vector<16x8xf32>
    %204 = tpu.transpose %202, [1, 0] : vector<16x8xf32> -> vector<8x16xf32>
    %cst_67 = arith.constant dense<0.000000e+00> : vector<16x16xf32>
    %205 = tpu.matmul %201, %204, %cst_67 {dimension_numbers = #tpu.dot_dimension_numbers<[1], [0], [0], [1], [0, 0, 1, 1], [], []>} : vector<16x8xf32>, vector<8x16xf32>, vector<16x16xf32> -> vector<16x16xf32>
    %206 = arith.addf %205, %20 : vector<16x16xf32>
    %cst_68 = arith.constant dense<0xFF800000> : vector<16xf32>
    %207 = vector.multi_reduction <maximumf>, %206, %cst_68 [1] : vector<16x16xf32> to vector<16xf32>
    %208 = vector.shape_cast %207 : vector<16xf32> to vector<16x1xf32>
    %209 = vector.broadcast %208 : vector<16x1xf32> to vector<16x16xf32>
    %210 = arith.subf %206, %209 : vector<16x16xf32>
    %211 = math.exp %210 : vector<16x16xf32>
    %cst_69 = arith.constant dense<0.000000e+00> : vector<16xf32>
    %212 = vector.multi_reduction <add>, %211, %cst_69 [1] : vector<16x16xf32> to vector<16xf32>
    %213 = vector.shape_cast %212 : vector<16xf32> to vector<16x1xf32>
    %214 = tpu.reciprocal %213 {approx = true} : vector<16x1xf32> -> vector<16x1xf32>
    %215 = vector.broadcast %214 : vector<16x1xf32> to vector<16x16xf32>
    %216 = arith.mulf %211, %215 : vector<16x16xf32>
    %cst_70 = arith.constant dense<0.000000e+00> : vector<16x8xf32>
    %217 = tpu.matmul %216, %203, %cst_70 {dimension_numbers = #tpu.dot_dimension_numbers<[1], [0], [0], [1], [0, 0, 1, 1], [], []>} : vector<16x16xf32>, vector<16x8xf32>, vector<16x8xf32> -> vector<16x8xf32>
    %218 = vector.extract_strided_slice %166 {offsets = [0, 24], sizes = [16, 8], strides = [1, 1]} : vector<16x96xf32> to vector<16x8xf32>
    %219 = vector.extract_strided_slice %166 {offsets = [0, 56], sizes = [16, 8], strides = [1, 1]} : vector<16x96xf32> to vector<16x8xf32>
    %220 = vector.extract_strided_slice %166 {offsets = [0, 88], sizes = [16, 8], strides = [1, 1]} : vector<16x96xf32> to vector<16x8xf32>
    %221 = tpu.transpose %219, [1, 0] : vector<16x8xf32> -> vector<8x16xf32>
    %cst_71 = arith.constant dense<0.000000e+00> : vector<16x16xf32>
    %222 = tpu.matmul %218, %221, %cst_71 {dimension_numbers = #tpu.dot_dimension_numbers<[1], [0], [0], [1], [0, 0, 1, 1], [], []>} : vector<16x8xf32>, vector<8x16xf32>, vector<16x16xf32> -> vector<16x16xf32>
    %223 = arith.addf %222, %20 : vector<16x16xf32>
    %cst_72 = arith.constant dense<0xFF800000> : vector<16xf32>
    %224 = vector.multi_reduction <maximumf>, %223, %cst_72 [1] : vector<16x16xf32> to vector<16xf32>
    %225 = vector.shape_cast %224 : vector<16xf32> to vector<16x1xf32>
    %226 = vector.broadcast %225 : vector<16x1xf32> to vector<16x16xf32>
    %227 = arith.subf %223, %226 : vector<16x16xf32>
    %228 = math.exp %227 : vector<16x16xf32>
    %cst_73 = arith.constant dense<0.000000e+00> : vector<16xf32>
    %229 = vector.multi_reduction <add>, %228, %cst_73 [1] : vector<16x16xf32> to vector<16xf32>
    %230 = vector.shape_cast %229 : vector<16xf32> to vector<16x1xf32>
    %231 = tpu.reciprocal %230 {approx = true} : vector<16x1xf32> -> vector<16x1xf32>
    %232 = vector.broadcast %231 : vector<16x1xf32> to vector<16x16xf32>
    %233 = arith.mulf %228, %232 : vector<16x16xf32>
    %cst_74 = arith.constant dense<0.000000e+00> : vector<16x8xf32>
    %234 = tpu.matmul %233, %220, %cst_74 {dimension_numbers = #tpu.dot_dimension_numbers<[1], [0], [0], [1], [0, 0, 1, 1], [], []>} : vector<16x16xf32>, vector<16x8xf32>, vector<16x8xf32> -> vector<16x8xf32>
    %235 = tpu.concatenate %183, %200, %217, %234 in 1 : vector<16x8xf32>, vector<16x8xf32>, vector<16x8xf32>, vector<16x8xf32> -> vector<16x32xf32>
    %c368 = arith.constant 368 : index
    %c0_75 = arith.constant 0 : index
    %236 = vector.load %arg2[%c368, %c0_75] : memref<640x128xf32, #tpu.memory_space<vmem>>, vector<32x32xf32>
    %c400 = arith.constant 400 : index
    %c0_76 = arith.constant 0 : index
    %237 = vector.load %arg2[%c400, %c0_76] : memref<640x128xf32, #tpu.memory_space<vmem>>, vector<1x32xf32>
    %cst_77 = arith.constant dense<0.000000e+00> : vector<16x32xf32>
    %238 = tpu.matmul %235, %236, %cst_77 {dimension_numbers = #tpu.dot_dimension_numbers<[1], [0], [0], [1], [0, 0, 1, 1], [], []>} : vector<16x32xf32>, vector<32x32xf32>, vector<16x32xf32> -> vector<16x32xf32>
    %239 = vector.broadcast %237 : vector<1x32xf32> to vector<16x32xf32>
    %240 = arith.addf %238, %239 : vector<16x32xf32>
    %241 = arith.addf %161, %240 : vector<16x32xf32>
    %c408 = arith.constant 408 : index
    %c0_78 = arith.constant 0 : index
    %242 = vector.load %arg2[%c408, %c0_78] : memref<640x128xf32, #tpu.memory_space<vmem>>, vector<1x32xf32>
    %c416 = arith.constant 416 : index
    %c0_79 = arith.constant 0 : index
    %243 = vector.load %arg2[%c416, %c0_79] : memref<640x128xf32, #tpu.memory_space<vmem>>, vector<1x32xf32>
    %cst_80 = arith.constant dense<0.000000e+00> : vector<16xf32>
    %244 = vector.multi_reduction <add>, %241, %cst_80 [1] : vector<16x32xf32> to vector<16xf32>
    %245 = vector.shape_cast %244 : vector<16xf32> to vector<16x1xf32>
    %cst_81 = arith.constant 3.200000e+01 : f32
    %246 = vector.broadcast %cst_81 : f32 to vector<16x1xf32>
    %247 = arith.divf %245, %246 : vector<16x1xf32>
    %248 = vector.broadcast %247 : vector<16x1xf32> to vector<16x32xf32>
    %249 = arith.subf %241, %248 : vector<16x32xf32>
    %250 = arith.mulf %249, %249 : vector<16x32xf32>
    %cst_82 = arith.constant dense<0.000000e+00> : vector<16xf32>
    %251 = vector.multi_reduction <add>, %250, %cst_82 [1] : vector<16x32xf32> to vector<16xf32>
    %252 = vector.shape_cast %251 : vector<16xf32> to vector<16x1xf32>
    %cst_83 = arith.constant 3.200000e+01 : f32
    %253 = vector.broadcast %cst_83 : f32 to vector<16x1xf32>
    %254 = arith.divf %252, %253 : vector<16x1xf32>
    %255 = vector.broadcast %247 : vector<16x1xf32> to vector<16x32xf32>
    %256 = arith.subf %241, %255 : vector<16x32xf32>
    %cst_84 = arith.constant 9.99999974E-6 : f32
    %257 = vector.broadcast %cst_84 : f32 to vector<16x1xf32>
    %258 = arith.addf %254, %257 : vector<16x1xf32>
    %259 = math.rsqrt %258 : vector<16x1xf32>
    %260 = vector.broadcast %259 : vector<16x1xf32> to vector<16x32xf32>
    %261 = arith.mulf %256, %260 : vector<16x32xf32>
    %262 = vector.broadcast %242 : vector<1x32xf32> to vector<16x32xf32>
    %263 = arith.mulf %261, %262 : vector<16x32xf32>
    %264 = vector.broadcast %243 : vector<1x32xf32> to vector<16x32xf32>
    %265 = arith.addf %263, %264 : vector<16x32xf32>
    %c424 = arith.constant 424 : index
    %c0_85 = arith.constant 0 : index
    %266 = vector.load %arg2[%c424, %c0_85] : memref<640x128xf32, #tpu.memory_space<vmem>>, vector<32x64xf32>
    %c456 = arith.constant 456 : index
    %c0_86 = arith.constant 0 : index
    %267 = vector.load %arg2[%c456, %c0_86] : memref<640x128xf32, #tpu.memory_space<vmem>>, vector<1x64xf32>
    %cst_87 = arith.constant dense<0.000000e+00> : vector<16x64xf32>
    %268 = tpu.matmul %265, %266, %cst_87 {dimension_numbers = #tpu.dot_dimension_numbers<[1], [0], [0], [1], [0, 0, 1, 1], [], []>} : vector<16x32xf32>, vector<32x64xf32>, vector<16x64xf32> -> vector<16x64xf32>
    %269 = vector.broadcast %267 : vector<1x64xf32> to vector<16x64xf32>
    %270 = arith.addf %268, %269 : vector<16x64xf32>
    %cst_88 = arith.constant 0.000000e+00 : f32
    %271 = vector.broadcast %cst_88 : f32 to vector<16x64xf32>
    %272 = arith.maximumf %270, %271 : vector<16x64xf32>
    %c464 = arith.constant 464 : index
    %c0_89 = arith.constant 0 : index
    %273 = vector.load %arg2[%c464, %c0_89] : memref<640x128xf32, #tpu.memory_space<vmem>>, vector<64x32xf32>
    %c528 = arith.constant 528 : index
    %c0_90 = arith.constant 0 : index
    %274 = vector.load %arg2[%c528, %c0_90] : memref<640x128xf32, #tpu.memory_space<vmem>>, vector<1x32xf32>
    %cst_91 = arith.constant dense<0.000000e+00> : vector<16x32xf32>
    %275 = tpu.matmul %272, %273, %cst_91 {dimension_numbers = #tpu.dot_dimension_numbers<[1], [0], [0], [1], [0, 0, 1, 1], [], []>} : vector<16x64xf32>, vector<64x32xf32>, vector<16x32xf32> -> vector<16x32xf32>
    %276 = vector.broadcast %274 : vector<1x32xf32> to vector<16x32xf32>
    %277 = arith.addf %275, %276 : vector<16x32xf32>
    %278 = arith.addf %265, %277 : vector<16x32xf32>
    %c536 = arith.constant 536 : index
    %c0_92 = arith.constant 0 : index
    %279 = vector.load %arg2[%c536, %c0_92] : memref<640x128xf32, #tpu.memory_space<vmem>>, vector<1x32xf32>
    %c544 = arith.constant 544 : index
    %c0_93 = arith.constant 0 : index
    %280 = vector.load %arg2[%c544, %c0_93] : memref<640x128xf32, #tpu.memory_space<vmem>>, vector<1x32xf32>
    %cst_94 = arith.constant dense<0.000000e+00> : vector<16xf32>
    %281 = vector.multi_reduction <add>, %278, %cst_94 [1] : vector<16x32xf32> to vector<16xf32>
    %282 = vector.shape_cast %281 : vector<16xf32> to vector<16x1xf32>
    %cst_95 = arith.constant 3.200000e+01 : f32
    %283 = vector.broadcast %cst_95 : f32 to vector<16x1xf32>
    %284 = arith.divf %282, %283 : vector<16x1xf32>
    %285 = vector.broadcast %284 : vector<16x1xf32> to vector<16x32xf32>
    %286 = arith.subf %278, %285 : vector<16x32xf32>
    %287 = arith.mulf %286, %286 : vector<16x32xf32>
    %cst_96 = arith.constant dense<0.000000e+00> : vector<16xf32>
    %288 = vector.multi_reduction <add>, %287, %cst_96 [1] : vector<16x32xf32> to vector<16xf32>
    %289 = vector.shape_cast %288 : vector<16xf32> to vector<16x1xf32>
    %cst_97 = arith.constant 3.200000e+01 : f32
    %290 = vector.broadcast %cst_97 : f32 to vector<16x1xf32>
    %291 = arith.divf %289, %290 : vector<16x1xf32>
    %292 = vector.broadcast %284 : vector<16x1xf32> to vector<16x32xf32>
    %293 = arith.subf %278, %292 : vector<16x32xf32>
    %cst_98 = arith.constant 9.99999974E-6 : f32
    %294 = vector.broadcast %cst_98 : f32 to vector<16x1xf32>
    %295 = arith.addf %291, %294 : vector<16x1xf32>
    %296 = math.rsqrt %295 : vector<16x1xf32>
    %297 = vector.broadcast %296 : vector<16x1xf32> to vector<16x32xf32>
    %298 = arith.mulf %293, %297 : vector<16x32xf32>
    %299 = vector.broadcast %279 : vector<1x32xf32> to vector<16x32xf32>
    %300 = arith.mulf %298, %299 : vector<16x32xf32>
    %301 = vector.broadcast %280 : vector<1x32xf32> to vector<16x32xf32>
    %302 = arith.addf %300, %301 : vector<16x32xf32>
    %c552 = arith.constant 552 : index
    %c0_99 = arith.constant 0 : index
    %303 = vector.load %arg2[%c552, %c0_99] : memref<640x128xf32, #tpu.memory_space<vmem>>, vector<32x16xf32>
    %c584 = arith.constant 584 : index
    %c0_100 = arith.constant 0 : index
    %304 = vector.load %arg2[%c584, %c0_100] : memref<640x128xf32, #tpu.memory_space<vmem>>, vector<1x16xf32>
    %cst_101 = arith.constant dense<0.000000e+00> : vector<16x16xf32>
    %305 = tpu.matmul %302, %303, %cst_101 {dimension_numbers = #tpu.dot_dimension_numbers<[1], [0], [0], [1], [0, 0, 1, 1], [], []>} : vector<16x32xf32>, vector<32x16xf32>, vector<16x16xf32> -> vector<16x16xf32>
    %306 = vector.broadcast %304 : vector<1x16xf32> to vector<16x16xf32>
    %307 = arith.addf %305, %306 : vector<16x16xf32>
    %cst_102 = arith.constant 0.000000e+00 : f32
    %308 = vector.broadcast %cst_102 : f32 to vector<16x16xf32>
    %309 = arith.maximumf %307, %308 : vector<16x16xf32>
    %c592 = arith.constant 592 : index
    %c0_103 = arith.constant 0 : index
    %310 = vector.load %arg2[%c592, %c0_103] : memref<640x128xf32, #tpu.memory_space<vmem>>, vector<16x1xf32>
    %c608 = arith.constant 608 : index
    %c0_104 = arith.constant 0 : index
    %311 = vector.load %arg2[%c608, %c0_104] : memref<640x128xf32, #tpu.memory_space<vmem>>, vector<1x1xf32>
    %cst_105 = arith.constant dense<0.000000e+00> : vector<16x1xf32>
    %312 = tpu.matmul %309, %310, %cst_105 {dimension_numbers = #tpu.dot_dimension_numbers<[1], [0], [0], [1], [0, 0, 1, 1], [], []>} : vector<16x16xf32>, vector<16x1xf32>, vector<16x1xf32> -> vector<16x1xf32>
    %313 = vector.broadcast %311 : vector<1x1xf32> to vector<16x1xf32>
    %314 = arith.addf %312, %313 : vector<16x1xf32>
    %315 = math.tanh %314 : vector<16x1xf32>
    %c632 = arith.constant 632 : index
    %c0_106 = arith.constant 0 : index
    %316 = vector.load %arg2[%c632, %c0_106] : memref<640x128xf32, #tpu.memory_space<vmem>>, vector<2x16xf32>
    %cst_107 = arith.constant dense<0.000000e+00> : vector<2x1xf32>
    %317 = tpu.matmul %316, %315, %cst_107 {dimension_numbers = #tpu.dot_dimension_numbers<[1], [0], [0], [1], [0, 0, 1, 1], [], []>} : vector<2x16xf32>, vector<16x1xf32>, vector<2x1xf32> -> vector<2x1xf32>
    %c0_108 = arith.constant 0 : index
    %c0_109 = arith.constant 0 : index
    %318 = vector.load %arg3[%c0_108, %c0_109] : memref<2x1xf32, #tpu.memory_space<vmem>>, vector<2x1xf32>
    tpu.vector_store %arg3[%c0_108, %c0_109], %317 {strides = array<i32>} : memref<2x1xf32, #tpu.memory_space<vmem>>, vector<2x1xf32>,
    return
  }
  func.func @transform_0(%arg0: i32) -> (i32, i32) {
    %c0_i32 = arith.constant 0 : i32
    %c0_i32_0 = arith.constant 0 : i32
    %c0_i32_1 = arith.constant 0 : i32
    return %c0_i32, %c0_i32_0 : i32, i32
  }
  func.func @transform_1(%arg0: i32) -> (i32, i32) {
    %c0_i32 = arith.constant 0 : i32
    %c0_i32_0 = arith.constant 0 : i32
    %c0_i32_1 = arith.constant 0 : i32
    return %c0_i32, %c0_i32_0 : i32, i32
  }
  func.func @transform_2(%arg0: i32) -> (i32, i32) {
    %c0_i32 = arith.constant 0 : i32
    %c0_i32_0 = arith.constant 0 : i32
    %c0_i32_1 = arith.constant 0 : i32
    return %c0_i32, %c0_i32_0 : i32, i32
  }
}

</mosaic_0001>

<bundles_post_ra>
// kernel: _lambda_.1
= control target key start
LH: loop header
LB: loop body
LE: loop exit
PB: predicated region body
PF: predicated region fallthrough
CT: control target
= control target key end

     0   :  { %7 = vsyncpa [#allocation3], 0  ;;  %s4462_s0 = inlined_call_operand.hbm [shape: f32[16,12], index: 0, kind: input, shape index: {}]   ;;  %s4463_s1 = inlined_call_operand.hbm [shape: f32[640,128], index: 1, kind: input, shape index: {}]   ;;  %s4464_s2 = inlined_call_operand.vmem [shape: f32[2,1], index: 2, kind: output, shape index: {}]  }
   0x1   :  { %8 = vsyncpa [#allocation5], 0  ;;  %s4094_s9 = smov [#allocation2]   ;;  %s4046_s13 = scalar_lea.hbm %s4462_s0, 256 }
   0x2   :  { %s14_s10 = sshll.u32 %s4094_s9, 4  ;;  %p4047_p0 = scmp.ne.s32.totalorder %s4462_s0, %s4046_s13  ;;  %s15_s10 = int_to_ptr.vmem [resolvable:$true] %s14_s10 }
   0x3   :  { %p4050_p1 = scmp.lt.u32.totalorder %s4046_s13, %s4462_s0 }
   0x5   :  { %p4052_p2 = pnand %p4050_p1, %p4047_p0 }
   0x7   :  { %4055 = shalt.err (!%p4052_p2)
}
   0x8   :  { %s4056_s18 = scalar_lea.vmem %s15_s10, 256  ;;  %p4061_p4 = scmp.lt.s32.totalorder %s15_s10, %s15_s10 }
   0x9   :  { %p4057_p3 = scmp.ne.s32.totalorder %s15_s10, %s4056_s18  ;;  %p4062_p5 = scmp.lt.s32.totalorder %s4056_s18, %s4056_s18 }
   0xb   :  { %p4063_p6 = por %p4062_p5, %p4061_p4 }
   0xd   :  { %p4064_p7 = pnand %p4063_p6, %p4057_p3 }
   0xf   :  { %4067 = shalt.err (!%p4064_p7)
}
  0x10   :  { %s4095_s19 = smov 128   ;;  %s4096_s20 = smov 8  }
  0x11   :  { %20 = dma.hbm_to_vmem [thread:$0]  %s4462_s0, 256, %s15_s10, [#allocation3], %s4095_s19, %s4095_s19, %s4096_s20  }
  0x12   :  { %s4097_s23 = smov [#allocation4]   ;;  %s4068_s27 = scalar_lea.hbm %s4463_s1, 10240 }
  0x13   :  { %s26_s24 = sshll.u32 %s4097_s23, 4  ;;  %p4069_p8 = scmp.ne.s32.totalorder %s4463_s1, %s4068_s27  ;;  %s27_s24 = int_to_ptr.vmem [resolvable:$true] %s26_s24 }
  0x14   :  { %p4072_p9 = scmp.lt.u32.totalorder %s4068_s27, %s4463_s1 }
  0x16   :  { %p4074_p10 = pnand %p4072_p9, %p4069_p8 }
  0x18   :  { %4077 = shalt.err (!%p4074_p10)
}
  0x19   :  { %s4078_s4 = scalar_lea.vmem %s27_s24, 10240  ;;  %p4083_p12 = scmp.lt.s32.totalorder %s27_s24, %s27_s24 }
  0x1a   :  { %p4079_p11 = scmp.ne.s32.totalorder %s27_s24, %s4078_s4  ;;  %p4084_p13 = scmp.lt.s32.totalorder %s4078_s4, %s4078_s4 }
  0x1c   :  { %p4085_p0 = por %p4084_p13, %p4083_p12 }
  0x1e   :  { %p4086_p1 = pnand %p4085_p0, %p4079_p11 }
  0x20   :  { %4089 = shalt.err (!%p4086_p1)
}
  0x21   :  { %32 = dma.hbm_to_vmem [thread:$0]  %s4463_s1, 10240, %s27_s24, [#allocation5], %s4095_s19, %s4095_s19, %s4096_s20  }
  0x22   :  { %4090 = dma.done.wait [#allocation3], 256  }
  0x23   :  { %4091 = vsyncadd [#allocation3], 4294967040 }
  0x24   :  { %4092 = dma.done.wait [#allocation5], 10240  }
  0x25   :  { %4093 = vsyncadd [#allocation5], 4294957056  ;;  %vm55_vm0 = vcmask 1043456   ;;  %vm48_vm1 = vcmask 97280   ;;  %vm4098_vm2 = vmmov 1   ;;  %v41_v0 = vld [vmem:[#allocation4] sm:$0xff] }
  0x26   :  { %vm3663_vm3 = vmpackc.low %vm55_vm0, %vm4098_vm2  ;;  %v42_v1 = vld [vmem:[#allocation4 + $0x8] sm:$0xf]  ;;  %v39_v2 = vld [vmem:[#allocation2] sm:$0xff]  ;;  %vm145_vm4 = vcmask 261120   ;;  %vm417_vm5 = vcmask 64512   ;;  %s4099_s1 = smov 120  }
  0x27   :  { %v3662_v3 = vpack.c.bf16 %v42_v1, %v41_v0  ;;  %3396 = vmatprep.mubr.msk.f32.mxu0 %vm48_vm1, %v39_v2  ;;  %v136_v4 = vld [vmem:[#allocation4 + $0x18] sm:$0xff]  ;;  %v137_v5 = vld [vmem:[#allocation4 + $0x20] sm:$0xff]  ;;  %v138_v8 = vld [vmem:[#allocation4 + $0x28] sm:$0xff]  ;;  %s4100_s6 = smov 96   ;;  %s4101_s7 = smov 88   ;;  %vm501_vm7 = vcmask 130048  }
  0x28   :  { %v3668_v6 = vpack.c.bf16 %v137_v5, %v136_v4  ;;  %v40_v7 = vld [vmem:[#allocation2 + $0x8] sm:$0xff]  ;;  %v139_v9 = vld [vmem:[#allocation4 + $0x30] sm:$0xff]  ;;  %v229_v11 = vld [vmem:[#allocation4 + $0x40] sm:$0xff]  ;;  %s4102_s8 = smov 64   ;;  %s4103_s9 = smov 80   ;;  %vm1239_vm8 = vcmask 195584  }
  0x29   :  { %3664 = vmatprep.subr.msk.bf16.mxu0 %vm3663_vm3, %v3662_v3  ;;  %v3672_v10 = vpack.c.bf16 %v139_v9, %v138_v8  ;;  %v230_v12 = vld [vmem:[#allocation4 + $0x48] sm:$0xff]  ;;  %v3146_v14 = vld [vmem:[#allocation4 + $0x10] ss:$0 sm:$0xff]  ;;  %v232_v22 = vld [vmem:[#allocation4 + $0x58] sm:$0xff]  ;;  %s4104_s10 = smov 56   ;;  %s4105_s11 = smov 112  }
  0x2a   :  { %3667 = vmatpush3.bf16.msk.msra.mxu0 %vm3663_vm3, %v3662_v3  ;;  %3669 = vmatprep.subr.bf16.mxu1 %v3668_v6  ;;  %v3676_v13 = vpack.c.bf16 %v230_v12, %v229_v11  ;;  %v231_v21 = vld [vmem:[#allocation4 + $0x50] sm:$0xff]  ;;  %v321_v24 = vld [vmem:[#allocation4 + $0x68] sm:$0xff]  ;;  %v3150_v27 = vld [vmem:[#allocation4 + $0x38] ss:$0 sm:$0xff]  ;;  %s4106_s12 = smov 72   ;;  %s4107_s13 = smov 104  }
  0x2b   :  { %3671 = vmatpush3.bf16.msra.mxu1 %v3668_v6  ;;  %v3680_v23 = vpack.c.bf16 %v232_v22, %v231_v21  ;;  %v322_v25 = vld [vmem:[#allocation4 + $0x70] sm:$0xff]  ;;  %v323_v34 = vld [vmem:[#allocation4 + $0x78] sm:$0xff]  ;;  %v324_v35 = vld [vmem:[#allocation4 + $0x80] sm:$0xff]  ;;  %s4108_s14 = smov 48   ;;  %s4109_s15 = smov 40   ;;  %vm1480_vm9 = vcmask 523264  }
  0x2c   :  { %3673 = vmatprep.subr.bf16.mxu1 %v3672_v10  ;;  %3677 = vmatprep.subr.bf16.mxu0 %v3676_v13  ;;  %v3684_v26 = vpack.c.bf16 %v322_v25, %v321_v24  ;;  %v3688_v36 = vpack.c.bf16 %v324_v35, %v323_v34  ;;  %v3153_v37 = vld [vmem:[#allocation4 + $0x60] ss:$0 sm:$0xff]  ;;  %v3156_v42 = vld [vmem:[#allocation4 + $0x88] ss:$0 sm:$0xff]  ;;  %vm4190_vm6 = vmpackc.low %vm417_vm5, %vm417_vm5  ;;  %s4110_s16 = smov 16   ;;  %s4111_s17 = smov 24  }
  0x2d   :  { %3397 = vmatmul.mubr.msk.f32.vlgmr.msra.gmra.mrb[0].mxu0 %vm48_vm1, %v40_v7  ;;  %v4206_v59 = vld [vmem:[#allocation4 + $0x270] sm:$0xff]  ;;  %v4208_v60 = vld [vmem:[#allocation4 + $0x268] sm:$0xff]  ;;  %vm4113_vm10 = vmmov 0   ;;  %vm3138_vm11 = vcmask 1024  }
  0x2e   :  { %3679 = vmatpush3.bf16.msra.mxu0 %v3676_v13 }
  0x2f   :  { %3675 = vmatpush3.bf16.msra.mxu1 %v3672_v10  ;;  %3681 = vmatprep.subr.bf16.mxu0 %v3680_v23 }
  0x30   :  { %3685 = vmatprep.subr.bf16.mxu1 %v3684_v26 }
  0x32   :  { %3683 = vmatpush3.bf16.msra.mxu0 %v3680_v23 }
 0x100   :  { %v3398_v15 = vpop.f32.mrb[0].mxu0 }
 0x101   :  { %v131_v16 = vadd.f32 %v3398_v15, %v3146_v14  ;;  %v125_v17 = vpop.f32.mrb[1].mxu0 }
 0x102   :  { %v126_v18 = vadd.f32 %v3146_v14, %v125_v17 }
 0x103   :  { %v135_v20 = vmax.f32 %v131_v16, 0.0 }
 0x104   :  { %v134_v19 = vmax.f32 %v126_v18, 0.0 }
 0x106   :  { %3407 = vmatprep.mubr.msk.f32.mxu1 %vm145_vm4, %v134_v19 }
 0x107   :  { %3408 = vmatmul.mubr.msk.f32.vlgmr.msra.gmra.mrb[0].mxu1 %vm145_vm4, %v135_v20 }
 0x108   :  { %3687 = vmatpush3.bf16.msra.mxu1 %v3684_v26 }
 0x109   :  { %3689 = vmatprep.subr.bf16.mxu1 %v3688_v36 }
 0x10c   :  { %3691 = vmatpush3.bf16.msra.mxu1 %v3688_v36 }
 0x1da   :  { %v3409_v28 = vpop.f32.mrb[0].mxu1 }
 0x1db   :  { %v224_v29 = vadd.f32 %v3409_v28, %v3150_v27  ;;  %v218_v30 = vpop.f32.mrb[1].mxu1 }
 0x1dc   :  { %v219_v31 = vadd.f32 %v3150_v27, %v218_v30 }
 0x1dd   :  { %v228_v33 = vmax.f32 %v224_v29, 0.0 }
 0x1de   :  { %v227_v32 = vmax.f32 %v219_v31, 0.0 }
 0x1e0   :  { %3418 = vmatprep.mubr.msk.f32.mxu0 %vm145_vm4, %v227_v32 }
 0x1e1   :  { %3419 = vmatmul.mubr.msk.f32.vlgmr.msra.gmra.mrb[2].mxu0 %vm145_vm4, %v228_v33 }
 0x2b4   :  { %v3420_v38 = vpop.f32.mrb[2].mxu0 }
 0x2b5   :  { %v310_v39 = vpop.f32.mrb[3].mxu0  ;;  %v4164_v41 = vadd.f32 %v3420_v38, %v3153_v37 }
 0x2b6   :  { %v4162_v40 = vadd.f32 %v3153_v37, %v310_v39 }
 0x2b8   :  { %3429 = vmatprep.mubr.msk.f32.mxu1 %vm145_vm4, %v4162_v40 }
 0x2b9   :  { %3430 = vmatmul.mubr.msk.f32.vlgmr.msra.gmra.mrb[2].mxu1 %vm145_vm4, %v4164_v41 }
 0x38c   :  { %v3431_v43 = vpop.f32.mrb[2].mxu1 }
 0x38d   :  { %v4170_v44 = vadd.f32 %v3431_v43, %v3156_v42  ;;  %v402_v45 = vpop.f32.mrb[3].mxu1 }
 0x38e   :  { %v4172_v46 = vadd.f32 %v3156_v42, %v402_v45 }
 0x390   :  { %611 = vrot.lane.b32.xlu1 %v4172_v46, %s4099_s1  ;;  %3436 = vmatprep.mubr.msk.f32.mxu0 %vm417_vm5, %v4172_v46  ;;  %v4180_v47 = vpack.i.bf16 %v4170_v44, %v4172_v46 }
 0x392   :  { %3881 = vrot.lane.b32.xlu0 %v4180_v47, %s4100_s6 }
 0x394   :  { %613 = vrot.lane.b32.xlu1 %v4170_v44, %s4099_s1 }
 0x396   :  { %3886 = vrot.lane.b32.xlu0 %v4180_v47, %s4101_s7 }
 0x402   :  { %v612_v57 = vpop.permute.xlu1 %611 }
 0x404   :  { %v3882_v48 = vpop.permute.xlu0 %3881 }
 0x405   :  { %v3884_v49 = vunpack.i.h.bf16 %v3882_v48  ;;  %v3883_v50 = vunpack.i.l.bf16 %v3882_v48 }
 0x406   :  { %v614_v58 = vpop.permute.xlu1 %613 }
 0x407   :  { %v3692_v52 = vpack.c.bf16 %v3884_v49, %v3883_v50 }
 0x408   :  { %v3887_v53 = vpop.permute.xlu0 %3886 }
 0x409   :  { %v3889_v54 = vunpack.i.h.bf16 %v3887_v53  ;;  %v3888_v55 = vunpack.i.l.bf16 %v3887_v53  ;;  %3694 = vmatprep.subr.msk.bf16.mxu0 %vm4190_vm6, %v3692_v52 }
 0x40a   :  { %3697 = vmatpush3.bf16.xpose.msk.msra.mxu0 %vm4190_vm6, %v3692_v52 }
 0x40b   :  { %v3702_v56 = vpack.c.bf16 %v3889_v54, %v3888_v55 }
 0x40d   :  { %3704 = vmatprep.subr.msk.bf16.mxu0 %vm4190_vm6, %v3702_v56 }
 0x411   :  { %3437 = vmatmul.mubr.msk.f32.vlgmr.msra.gmra.mrb[4].mxu0 %vm417_vm5, %v4170_v44 }
 0x412   :  { %3707 = vmatpush3.bf16.xpose.msk.msra.mxu0 %vm4190_vm6, %v3702_v56  ;;  %3450 = vmatprep.mubr.msk.f32.mxu0 %vm417_vm5, %v612_v57 }
 0x419   :  { %3451 = vmatmul.mubr.msk.f32.vlgmr.msra.gmra.mrb[6].mxu0 %vm417_vm5, %v614_v58 }
 0x4e4   :  { %v3438_v61 = vpop.f32.mrb[4].mxu0 }
 0x4e5   :  { %v498_v62 = vadd.f32 %v3438_v61, %v4206_v59  ;;  %v492_v63 = vpop.f32.mrb[5].mxu0 }
 0x4e6   :  { %v493_v0 = vadd.f32 %v492_v63, %v4208_v60 }
 0x4e7   :  { %v505_v1 = vsel %vm501_vm7, %v498_v62, -inf }
 0x4e8   :  { %506 = vmax.xlane.f32.xlu1 %v505_v1  ;;  %v502_v2 = vsel %vm501_vm7, %v493_v0, -inf }
 0x4e9   :  { %503 = vmax.xlane.f32.xlu0 %v502_v2 }
 0x4ec   :  { %v3452_v3 = vpop.f32.mrb[6].mxu0 }
 0x4ed   :  { %v693_v4 = vpop.f32.mrb[7].mxu0  ;;  %v699_v6 = vadd.f32 %v3452_v3, %v4206_v59 }
 0x4ee   :  { %v694_v5 = vadd.f32 %v693_v4, %v4208_v60 }
 0x4ef   :  { %v705_v8 = vsel %vm501_vm7, %v699_v6, -inf }
 0x4f0   :  { %v702_v7 = vsel %vm501_vm7, %v694_v5, -inf }
 0x4f1   :  { %703 = vmax.xlane.f32.xlu0 %v702_v7 }
 0x4f5   :  { %706 = vmax.xlane.f32.xlu0 %v705_v8 }
 0x4f9   :  { %3891 = vrot.lane.b32.xlu1 %v4180_v47, %s4102_s8 }
 0x575   :  { %v507_v9 = vpop.xlane.xlu1 %506 }
 0x576   :  { %v509_v10 = vsub.f32 %v498_v62, %v507_v9  ;;  %v504_v11 = vpop.xlane.xlu0 %503 }
 0x577   :  { %v508_v12 = vsub.f32 %v493_v0, %v504_v11 }
 0x578   :  { %v512_v13 = vmul.f32 1.442695, %v509_v10 }
 0x579   :  { %v510_v14 = vmul.f32 1.442695, %v508_v12  ;;  %v3892_v15 = vpop.permute.xlu1 %3891 }
 0x57a   :  { %3960 = vpow2.f32 %v512_v13  ;;  %v3894_v16 = vunpack.i.h.bf16 %v3892_v15  ;;  %v3893_v17 = vunpack.i.l.bf16 %v3892_v15 }
 0x57b   :  { %3962 = vpow2.f32 %v510_v14 }
 0x57c   :  { %v3698_v18 = vpack.c.bf16 %v3894_v16, %v3893_v17 }
 0x57e   :  { %3699 = vmatprep.subr.bf16.mxu1 %v3698_v18  ;;  %v704_v19 = vpop.xlane.xlu0 %703 }
 0x57f   :  { %3701 = vmatpush3.bf16.msra.mxu1 %v3698_v18  ;;  %v708_v29 = vsub.f32 %v694_v5, %v704_v19 }
 0x581   :  { %v710_v30 = vmul.f32 1.442695, %v708_v29 }
 0x582   :  { %v707_v20 = vpop.xlane.xlu0 %706 }
 0x583   :  { %v709_v21 = vsub.f32 %v699_v6, %v707_v20 }
 0x584   :  { %v3961_v22 = vpop.eup %3960 }
 0x585   :  { %v3963_v23 = vpop.eup %3962  ;;  %v712_v24 = vmul.f32 1.442695, %v709_v21  ;;  %v517_v25 = vsel %vm501_vm7, %v3961_v22, 0.0 }
 0x586   :  { %518 = vadd.xlane.f32.xlu0 %v517_v25  ;;  %v514_v26 = vsel %vm501_vm7, %v3963_v23, 0.0 }
 0x587   :  { %3964 = vpow2.f32 %v712_v24  ;;  %515 = vadd.xlane.f32.xlu1 %v514_v26 }
 0x588   :  { %3966 = vpow2.f32 %v710_v30 }
 0x591   :  { %v3965_v27 = vpop.eup %3964 }
 0x592   :  { %v717_v28 = vsel %vm501_vm7, %v3965_v27, 0.0  ;;  %v3967_v31 = vpop.eup %3966 }
 0x593   :  { %718 = vadd.xlane.f32.xlu0 %v717_v28  ;;  %v714_v32 = vsel %vm501_vm7, %v3967_v31, 0.0 }
 0x598   :  { %3901 = vrot.lane.b32.xlu1 %v4180_v47, %s4103_s9 }
 0x5a9   :  { %3896 = vrot.lane.b32.xlu0 %v4180_v47, %s4104_s10 }
 0x5ad   :  { %813 = vrot.lane.b32.xlu0 %v4170_v44, %s4105_s11 }
 0x5bc   :  { %715 = vadd.xlane.f32.xlu1 %v714_v32 }
 0x5cd   :  { %811 = vrot.lane.b32.xlu1 %v4172_v46, %s4105_s11 }
 0x613   :  { %v519_v33 = vpop.xlane.xlu0 %518 }
 0x614   :  { %3968 = vrcp.f32 %v519_v33  ;;  %v516_v34 = vpop.xlane.xlu1 %515 }
 0x615   :  { %3970 = vrcp.f32 %v516_v34 }
 0x618   :  { %v3902_v42 = vpop.permute.xlu1 %3901 }
 0x619   :  { %v3904_v45 = vunpack.i.h.bf16 %v3902_v42  ;;  %v3903_v48 = vunpack.i.l.bf16 %v3902_v42 }
 0x61b   :  { %v3712_v53 = vpack.c.bf16 %v3904_v45, %v3903_v48 }
 0x61e   :  { %v3969_v35 = vpop.eup %3968 }
 0x61f   :  { %v3971_v36 = vpop.eup %3970  ;;  %v523_v39 = vmul.f32 %v3969_v35, %v3961_v22 }
 0x620   :  { %v719_v37 = vpop.xlane.xlu0 %718  ;;  %v522_v38 = vmul.f32 %v3971_v36, %v3963_v23 }
 0x621   :  { %3972 = vrcp.f32 %v719_v37 }
 0x622   :  { %3443 = vmatprep.mubr.msk.f32.mxu1 %vm501_vm7, %v522_v38 }
 0x623   :  { %3444 = vmatmul.mubr.msk.f32.vlgmr.msra.gmra.mrb[4].mxu1 %vm501_vm7, %v523_v39 }
 0x624   :  { %v3897_v43 = vpop.permute.xlu0 %3896 }
 0x625   :  { %v3899_v49 = vunpack.i.h.bf16 %v3897_v43  ;;  %v3898_v50 = vunpack.i.l.bf16 %v3897_v43 }
 0x627   :  { %v3708_v52 = vpack.c.bf16 %v3899_v49, %v3898_v50 }
 0x628   :  { %v814_v62 = vpop.permute.xlu0 %813 }
 0x629   :  { %3709 = vmatprep.subr.bf16.mxu1 %v3708_v52 }
 0x62a   :  { %3711 = vmatpush3.bf16.msra.mxu1 %v3708_v52 }
 0x62b   :  { %3714 = vmatprep.subr.msk.bf16.mxu1 %vm4190_vm6, %v3712_v53  ;;  %v3973_v55 = vpop.eup %3972 }
 0x62c   :  { %v723_v58 = vmul.f32 %v3973_v55, %v3965_v27 }
 0x649   :  { %v716_v54 = vpop.xlane.xlu1 %715 }
 0x64a   :  { %3974 = vrcp.f32 %v716_v54 }
 0x64d   :  { %v812_v61 = vpop.permute.xlu1 %811 }
 0x654   :  { %v3975_v56 = vpop.eup %3974 }
 0x655   :  { %v722_v57 = vmul.f32 %v3975_v56, %v3967_v31 }
 0x657   :  { %3457 = vmatprep.mubr.msk.f32.mxu1 %vm501_vm7, %v722_v57 }
 0x658   :  { %3458 = vmatmul.mubr.msk.f32.vlgmr.msra.gmra.mrb[6].mxu1 %vm501_vm7, %v723_v58 }
 0x659   :  { %3717 = vmatpush3.bf16.xpose.msk.msra.mxu1 %vm4190_vm6, %v3712_v53  ;;  %3464 = vmatprep.mubr.msk.f32.mxu1 %vm417_vm5, %v812_v61 }
 0x660   :  { %3465 = vmatmul.mubr.msk.f32.vlgmr.msra.gmra.mrb[8].mxu1 %vm417_vm5, %v814_v62 }
 0x6f6   :  { %v4242_v63 = vpop.f32.mrb[4].mxu1 }
 0x6f7   :  { %v4244_v0 = vpop.f32.mrb[5].mxu1 }
 0x72b   :  { %v4246_v1 = vpop.f32.mrb[6].mxu1 }
 0x72c   :  { %v4248_v2 = vpop.f32.mrb[7].mxu1 }
 0x733   :  { %v3466_v3 = vpop.f32.mrb[8].mxu1 }
 0x734   :  { %v899_v4 = vadd.f32 %v3466_v3, %v4206_v59  ;;  %v893_v5 = vpop.f32.mrb[9].mxu1 }
 0x735   :  { %v894_v6 = vadd.f32 %v893_v5, %v4208_v60 }
 0x736   :  { %v905_v7 = vsel %vm501_vm7, %v899_v4, -inf }
 0x737   :  { %906 = vmax.xlane.f32.xlu0 %v905_v7  ;;  %v902_v8 = vsel %vm501_vm7, %v894_v6, -inf  ;;  %v1243_v7 = vld [vmem:[#allocation4 + $0x98] sm:$0xff] }
 0x738   :  { %903 = vmax.xlane.f32.xlu1 %v902_v8  ;;  %v1244_v8 = vld [vmem:[#allocation4 + $0xa0] sm:$0xff] }
 0x7c4   :  { %v907_v9 = vpop.xlane.xlu0 %906 }
 0x7c5   :  { %v909_v10 = vsub.f32 %v899_v4, %v907_v9  ;;  %v904_v11 = vpop.xlane.xlu1 %903 }
 0x7c6   :  { %v908_v12 = vsub.f32 %v894_v6, %v904_v11 }
 0x7c7   :  { %v912_v13 = vmul.f32 1.442695, %v909_v10  ;;  %v1245_v10 = vld [vmem:[#allocation4 + $0xa8] sm:$0xff] }
 0x7c8   :  { %v910_v14 = vmul.f32 1.442695, %v908_v12  ;;  %v3736_v11 = vpack.c.bf16 %v1245_v10, %v1244_v8  ;;  %v3187_v8 = vld [vmem:[#allocation4 + $0xc0] ss:$0 sm:$0xff] }
 0x7c9   :  { %3976 = vpow2.f32 %v912_v13 }
 0x7ca   :  { %3978 = vpow2.f32 %v910_v14 }
 0x7d3   :  { %v3977_v15 = vpop.eup %3976 }
 0x7d4   :  { %v3979_v16 = vpop.eup %3978  ;;  %v917_v17 = vsel %vm501_vm7, %v3977_v15, 0.0 }
 0x7d5   :  { %918 = vadd.xlane.f32.xlu1 %v917_v17  ;;  %v914_v18 = vsel %vm501_vm7, %v3979_v16, 0.0 }
 0x7d6   :  { %915 = vadd.xlane.f32.xlu0 %v914_v18 }
 0x7e6   :  { %3911 = vrot.lane.b32.xlu1 %v4180_v47, %s4106_s12 }
 0x7ea   :  { %1011 = vrot.lane.b32.xlu1 %v4172_v46, %s4107_s13 }
 0x7ec   :  { %3906 = vrot.lane.b32.xlu0 %v4180_v47, %s4108_s14 }
 0x7f0   :  { %1013 = vrot.lane.b32.xlu0 %v4170_v44, %s4107_s13 }
 0x862   :  { %v919_v19 = vpop.xlane.xlu1 %918 }
 0x863   :  { %3980 = vrcp.f32 %v919_v19  ;;  %v916_v20 = vpop.xlane.xlu0 %915 }
 0x864   :  { %3982 = vrcp.f32 %v916_v20 }
 0x866   :  { %v3912_v21 = vpop.permute.xlu1 %3911 }
 0x867   :  { %v3907_v22 = vpop.permute.xlu0 %3906  ;;  %v3914_v23 = vunpack.i.h.bf16 %v3912_v21  ;;  %v3913_v24 = vunpack.i.l.bf16 %v3912_v21 }
 0x868   :  { %v3909_v25 = vunpack.i.h.bf16 %v3907_v22  ;;  %v3908_v26 = vunpack.i.l.bf16 %v3907_v22 }
 0x869   :  { %v3722_v28 = vpack.c.bf16 %v3914_v23, %v3913_v24 }
 0x86a   :  { %v3718_v27 = vpack.c.bf16 %v3909_v25, %v3908_v26  ;;  %v1012_v31 = vpop.permute.xlu1 %1011  ;;  %v3183_v26 = vld [vmem:[#allocation4 + $0xb0] ss:$0 sm:$0xff] }
 0x86b   :  { %v1014_v32 = vpop.permute.xlu0 %1013 }
 0x86c   :  { %3719 = vmatprep.subr.bf16.mxu0 %v3718_v27 }
 0x86d   :  { %v3981_v46 = vpop.eup %3980  ;;  %3721 = vmatpush3.bf16.msra.mxu0 %v3718_v27 }
 0x86e   :  { %v3983_v29 = vpop.eup %3982  ;;  %3724 = vmatprep.subr.msk.bf16.mxu0 %vm4190_vm6, %v3722_v28  ;;  %v923_v30 = vmul.f32 %v3981_v46, %v3977_v15 }
 0x86f   :  { %v922_v44 = vmul.f32 %v3983_v29, %v3979_v16 }
 0x871   :  { %3471 = vmatprep.mubr.msk.f32.mxu0 %vm501_vm7, %v922_v44 }
 0x872   :  { %3472 = vmatmul.mubr.msk.f32.vlgmr.msra.gmra.mrb[8].mxu0 %vm501_vm7, %v923_v30 }
 0x873   :  { %3478 = vmatprep.mubr.msk.f32.mxu0 %vm417_vm5, %v1012_v31 }
 0x876   :  { %3727 = vmatpush3.bf16.xpose.msk.msra.mxu0 %vm4190_vm6, %v3722_v28 }
 0x87d   :  { %3479 = vmatmul.mubr.msk.f32.vlgmr.msra.gmra.mrb[10].mxu0 %vm417_vm5, %v1014_v32 }
 0x945   :  { %v3473_v33 = vpop.f32.mrb[8].mxu0 }
 0x946   :  { %v1002_v34 = vpop.f32.mrb[9].mxu0 }
 0x950   :  { %v3480_v35 = vpop.f32.mrb[10].mxu0 }
 0x951   :  { %v1099_v36 = vadd.f32 %v3480_v35, %v4206_v59  ;;  %v1093_v37 = vpop.f32.mrb[11].mxu0 }
 0x952   :  { %v1094_v38 = vadd.f32 %v1093_v37, %v4208_v60 }
 0x953   :  { %v1105_v39 = vsel %vm501_vm7, %v1099_v36, -inf }
 0x954   :  { %1106 = vmax.xlane.f32.xlu0 %v1105_v39  ;;  %v1102_v42 = vsel %vm501_vm7, %v1094_v38, -inf }
 0x955   :  { %1103 = vmax.xlane.f32.xlu1 %v1102_v42  ;;  %v1376_v42 = vld [vmem:[#allocation4 + $0xd0] sm:$0xff] }
 0x9e1   :  { %v1107_v43 = vpop.xlane.xlu0 %1106 }
 0x9e2   :  { %v1109_v45 = vsub.f32 %v1099_v36, %v1107_v43  ;;  %v1104_v48 = vpop.xlane.xlu1 %1103 }
 0x9e3   :  { %v1108_v49 = vsub.f32 %v1094_v38, %v1104_v48  ;;  %v1378_v48 = vld [vmem:[#allocation4 + $0xe0] sm:$0xff] }
 0x9e4   :  { %v1112_v50 = vmul.f32 1.442695, %v1109_v45  ;;  %v1377_v45 = vld [vmem:[#allocation4 + $0xd8] sm:$0xff] }
 0x9e5   :  { %v1110_v52 = vmul.f32 1.442695, %v1108_v49  ;;  %v3744_v49 = vpack.c.bf16 %v1378_v48, %v1377_v45  ;;  %v1607_v45 = vld [vmem:[#allocation4 + $0x160] sm:$0xff] }
 0x9e6   :  { %3984 = vpow2.f32 %v1112_v50  ;;  %v1467_v50 = vld [vmem:[#allocation4 + $0xf0] sm:$0xff] }
 0x9e7   :  { %3986 = vpow2.f32 %v1110_v52  ;;  %v1468_v52 = vld [vmem:[#allocation4 + $0xf8] sm:$0xff] }
 0x9f0   :  { %v3985_v53 = vpop.eup %3984 }
 0x9f1   :  { %v3987_v54 = vpop.eup %3986  ;;  %v1117_v55 = vsel %vm501_vm7, %v3985_v53, 0.0 }
 0x9f2   :  { %1118 = vadd.xlane.f32.xlu1 %v1117_v55  ;;  %v1114_v56 = vsel %vm501_vm7, %v3987_v54, 0.0  ;;  %v1470_v55 = vld [vmem:[#allocation4 + $0x108] sm:$0xff] }
 0x9f3   :  { %1115 = vadd.xlane.f32.xlu0 %v1114_v56 }
 0xa03   :  { %1213 = vrot.lane.b32.xlu1 %v4248_v2, %s4096_s20 }
 0xa07   :  { %1215 = vrot.lane.b32.xlu1 %v4246_v1, %s4096_s20 }
 0xa09   :  { %3916 = vrot.lane.b32.xlu0 %v4180_v47, %s4109_s15  ;;  %v1242_v47 = vld [vmem:[#allocation4 + $0x90] sm:$0xff] }
 0xa0a   :  { %v3732_v9 = vpack.c.bf16 %v1243_v7, %v1242_v47  ;;  %v3186_v47 = vld [vmem:[#allocation4 + $0xb8] ss:$0 sm:$0xff] }
 0xa0b   :  { %1223 = vrot.lane.b32.xlu1 %v3473_v33, %s4110_s16 }
 0xa0d   :  { %1221 = vrot.lane.b32.xlu0 %v1002_v34, %s4110_s16 }
 0xa7f   :  { %v1119_v57 = vpop.xlane.xlu1 %1118 }
 0xa80   :  { %3988 = vrcp.f32 %v1119_v57  ;;  %v1116_v58 = vpop.xlane.xlu0 %1115  ;;  %v1471_v57 = vld [vmem:[#allocation4 + $0x110] sm:$0xff] }
 0xa81   :  { %3990 = vrcp.f32 %v1116_v58  ;;  %v1472_v58 = vld [vmem:[#allocation4 + $0x118] sm:$0xff] }
 0xa83   :  { %v1214_v14 = vpop.permute.xlu1 %1213 }
 0xa84   :  { %v3917_v61 = vpop.permute.xlu0 %3916  ;;  %v1235_v18 = vsel %vm417_vm5, %v4244_v0, %v1214_v14 }
 0xa85   :  { %v3919_v62 = vunpack.i.h.bf16 %v3917_v61  ;;  %v3918_v3 = vunpack.i.l.bf16 %v3917_v61  ;;  %v3756_v61 = vpack.c.bf16 %v1472_v58, %v1471_v57  ;;  %v3194_v57 = vld [vmem:[#allocation4 + $0x138] ss:$0 sm:$0xff] }
 0xa87   :  { %v3728_v2 = vpack.c.bf16 %v3919_v62, %v3918_v3  ;;  %v1216_v15 = vpop.permute.xlu1 %1215 }
 0xa88   :  { %v1222_v17 = vpop.permute.xlu0 %1221  ;;  %v1236_v20 = vsel %vm417_vm5, %v4242_v63, %v1216_v15  ;;  %v1473_v15 = vld [vmem:[#allocation4 + $0x120] sm:$0xff] }
 0xa89   :  { %3729 = vmatprep.subr.bf16.mxu1 %v3728_v2  ;;  %v1237_v21 = vsel %vm501_vm7, %v1235_v18, %v1222_v17  ;;  %v3188_v18 = vld [vmem:[#allocation4 + $0xe8] ss:$0 sm:$0xff] }
 0xa8a   :  { %v3989_v4 = vpop.eup %3988  ;;  %3731 = vmatpush3.bf16.msra.mxu1 %v3728_v2 }
 0xa8b   :  { %v3991_v1 = vpop.eup %3990  ;;  %v1123_v6 = vmul.f32 %v3989_v4, %v3985_v53  ;;  %3733 = vmatprep.subr.bf16.mxu1 %v3732_v9  ;;  %v1224_v16 = vpop.permute.xlu1 %1223  ;;  %v1469_v53 = vld [vmem:[#allocation4 + $0x100] sm:$0xff] }
 0xa8c   :  { %v1122_v5 = vmul.f32 %v3991_v1, %v3987_v54  ;;  %v1238_v23 = vsel %vm501_vm7, %v1236_v20, %v1224_v16  ;;  %v3748_v54 = vpack.c.bf16 %v1468_v52, %v1467_v50  ;;  %v3752_v56 = vpack.c.bf16 %v1470_v55, %v1469_v53  ;;  %v1474_v16 = vld [vmem:[#allocation4 + $0x128] sm:$0xff] }
 0xa8d   :  { %v3760_v17 = vpack.c.bf16 %v1474_v16, %v1473_v15 }
 0xa8e   :  { %3485 = vmatprep.mubr.msk.f32.mxu1 %vm501_vm7, %v1122_v5 }
 0xa8f   :  { %3486 = vmatmul.mubr.msk.f32.vlgmr.msra.gmra.mrb[10].mxu1 %vm501_vm7, %v1123_v6 }
 0xa90   :  { %3735 = vmatpush3.bf16.msra.mxu1 %v3732_v9 }
 0xa91   :  { %3737 = vmatprep.subr.bf16.mxu1 %v3736_v11 }
 0xa94   :  { %3739 = vmatpush3.bf16.msra.mxu1 %v3736_v11 }
 0xa95   :  { %3749 = vmatprep.subr.bf16.mxu1 %v3748_v54 }
 0xb62   :  { %v3487_v12 = vpop.f32.mrb[10].mxu1 }
 0xb63   :  { %1231 = vrot.lane.b32.xlu1 %v3487_v12, %s4111_s17  ;;  %v1202_v13 = vpop.f32.mrb[11].mxu1 }
 0xb64   :  { %1229 = vrot.lane.b32.xlu0 %v1202_v13, %s4111_s17 }
 0xbd5   :  { %v1232_v19 = vpop.permute.xlu1 %1231 }
 0xbd6   :  { %v1230_v22 = vpop.permute.xlu0 %1229  ;;  %v1241_v25 = vsel %vm1239_vm8, %v1238_v23, %v1232_v19 }
 0xbd7   :  { %v1240_v24 = vsel %vm1239_vm8, %v1237_v21, %v1230_v22 }
 0xbd8   :  { %3496 = vmatprep.mubr.msk.f32.mxu1 %vm145_vm4, %v1240_v24 }
 0xbd9   :  { %3497 = vmatmul.mubr.msk.f32.vlgmr.msra.gmra.mrb[12].mxu1 %vm145_vm4, %v1241_v25  ;;  %v3191_v25 = vld [vmem:[#allocation4 + $0x130] ss:$0 sm:$0xff] }
 0xbda   :  { %3751 = vmatpush3.bf16.msra.mxu1 %v3748_v54 }
 0xbdb   :  { %3753 = vmatprep.subr.bf16.mxu1 %v3752_v56 }
 0xbde   :  { %3755 = vmatpush3.bf16.msra.mxu1 %v3752_v56 }
 0xbdf   :  { %3757 = vmatprep.subr.bf16.mxu1 %v3756_v61 }
 0xbe2   :  { %3759 = vmatpush3.bf16.msra.mxu1 %v3756_v61 }
 0xbe3   :  { %3761 = vmatprep.subr.bf16.mxu1 %v3760_v17 }
 0xbe6   :  { %3763 = vmatpush3.bf16.msra.mxu1 %v3760_v17 }
 0xcac   :  { %v3498_v27 = vpop.f32.mrb[12].mxu1 }
 0xcad   :  { %v1329_v0 = vadd.f32 %v3498_v27, %v3183_v26  ;;  %v1323_v28 = vpop.f32.mrb[13].mxu1 }
 0xcae   :  { %v1324_v46 = vadd.f32 %v3183_v26, %v1323_v28 }
 0xcaf   :  { %v1333_v63 = vadd.f32 %v1329_v0, %v4164_v41 }
 0xcb0   :  { %v1332_v29 = vadd.f32 %v1324_v46, %v4162_v40  ;;  %v1375_v40 = vld [vmem:[#allocation4 + $0xc8] sm:$0xff] }
 0xcb1   :  { %v1339_v44 = vsel %vm145_vm4, %v1333_v63, 0.0  ;;  %v3740_v43 = vpack.c.bf16 %v1376_v42, %v1375_v40  ;;  %v1605_v40 = vld [vmem:[#allocation4 + $0x150] sm:$0xff] }
 0xcb2   :  { %1340 = vadd.xlane.f32.xlu1 %v1339_v44  ;;  %v1336_v30 = vsel %vm145_vm4, %v1332_v29, 0.0 }
 0xcb3   :  { %1337 = vadd.xlane.f32.xlu0 %v1336_v30  ;;  %3741 = vmatprep.subr.bf16.mxu0 %v3740_v43 }
 0xcb4   :  { %3743 = vmatpush3.bf16.msra.mxu0 %v3740_v43  ;;  %v1606_v43 = vld [vmem:[#allocation4 + $0x158] sm:$0xff] }
 0xcb5   :  { %3745 = vmatprep.subr.bf16.mxu0 %v3744_v49  ;;  %v3768_v48 = vpack.c.bf16 %v1607_v45, %v1606_v43 }
 0xcb8   :  { %3747 = vmatpush3.bf16.msra.mxu0 %v3744_v49 }
 0xd3f   :  { %v1341_v31 = vpop.xlane.xlu1 %1340 }
 0xd40   :  { %v1344_v32 = vmul.f32 0.03125, %v1341_v31  ;;  %v1338_v33 = vpop.xlane.xlu0 %1337 }
 0xd41   :  { %v1343_v34 = vmul.f32 0.03125, %v1338_v33 }
 0xd42   :  { %v1346_v35 = vsub.f32 %v1333_v63, %v1344_v32 }
 0xd43   :  { %v1345_v36 = vsub.f32 %v1332_v29, %v1343_v34 }
 0xd44   :  { %v1348_v39 = vmul.f32 %v1346_v35, %v1346_v35 }
 0xd45   :  { %v1347_v37 = vmul.f32 %v1345_v36, %v1345_v36 }
 0xd46   :  { %v1352_v41 = vsel %vm145_vm4, %v1348_v39, 0.0 }
 0xd47   :  { %v1349_v38 = vsel %vm145_vm4, %v1347_v37, 0.0 }
 0xd48   :  { %1350 = vadd.xlane.f32.xlu0 %v1349_v38 }
 0xd4c   :  { %1353 = vadd.xlane.f32.xlu0 %v1352_v41  ;;  %v1604_v41 = vld [vmem:[#allocation4 + $0x148] sm:$0xff] }
 0xd4d   :  { %v3764_v42 = vpack.c.bf16 %v1605_v40, %v1604_v41 }
 0xd4f   :  { %3765 = vmatprep.subr.bf16.mxu0 %v3764_v42 }
 0xdd5   :  { %v1351_v62 = vpop.xlane.xlu0 %1350 }
 0xdd6   :  { %v1355_v3 = vmul.f32 0.03125, %v1351_v62 }
 0xdd8   :  { %v1357_v2 = vadd.f32 1e-05, %v1355_v3  ;;  %v3195_v3 = vld [vmem:[#allocation4 + $0x140] ss:$0 sm:$0xff] }
 0xdd9   :  { %v1354_v4 = vpop.xlane.xlu0 %1353 }
 0xdda   :  { %3992 = vrsqrt.f32 %v1357_v2  ;;  %v1356_v1 = vmul.f32 0.03125, %v1354_v4 }
 0xddc   :  { %v1358_v5 = vadd.f32 1e-05, %v1356_v1 }
 0xdde   :  { %3994 = vrsqrt.f32 %v1358_v5 }
 0xde4   :  { %v3993_v6 = vpop.eup %3992 }
 0xde5   :  { %v1361_v7 = vmul.f32 %v3993_v6, %v1345_v36  ;;  %v3196_v6 = vld [vmem:[#allocation4 + $0x168] ss:$0 sm:$0xff] }
 0xde7   :  { %v1367_v9 = vmul.f32 %v3186_v47, %v1361_v7 }
 0xde8   :  { %v3995_v10 = vpop.eup %3994 }
 0xde9   :  { %v1362_v11 = vmul.f32 %v3995_v10, %v1346_v35  ;;  %v1373_v12 = vadd.f32 %v3187_v8, %v1367_v9 }
 0xdeb   :  { %v1368_v13 = vmul.f32 %v3186_v47, %v1362_v11  ;;  %3507 = vmatprep.mubr.msk.f32.mxu0 %vm145_vm4, %v1373_v12 }
 0xded   :  { %v1374_v14 = vadd.f32 %v3187_v8, %v1368_v13 }
 0xdef   :  { %3508 = vmatmul.mubr.msk.f32.vlgmr.msra.gmra.mrb[12].mxu0 %vm145_vm4, %v1374_v14 }
 0xdf0   :  { %3767 = vmatpush3.bf16.msra.mxu0 %v3764_v42 }
 0xdf1   :  { %3769 = vmatprep.subr.bf16.mxu0 %v3768_v48 }
 0xdf4   :  { %3771 = vmatpush3.bf16.msra.mxu0 %v3768_v48 }
 0xec2   :  { %v3509_v19 = vpop.f32.mrb[12].mxu0 }
 0xec3   :  { %v1462_v20 = vadd.f32 %v3509_v19, %v3188_v18  ;;  %v1456_v21 = vpop.f32.mrb[13].mxu0 }
 0xec4   :  { %v1457_v22 = vadd.f32 %v3188_v18, %v1456_v21 }
 0xec5   :  { %v1466_v24 = vmax.f32 %v1462_v20, 0.0 }
 0xec6   :  { %v1465_v23 = vmax.f32 %v1457_v22, 0.0 }
 0xec8   :  { %3526 = vmatprep.mubr.msk.f32.mxu1 %vm1480_vm9, %v1465_v23 }
 0xec9   :  { %3527 = vmatmul.mubr.msk.f32.vlgmr.msra.gmra.mrb[14].mxu1 %vm1480_vm9, %v1466_v24 }
 0xf9c   :  { %v3528_v26 = vpop.f32.mrb[14].mxu1 }
 0xf9d   :  { %v1559_v27 = vadd.f32 %v3528_v26, %v3191_v25  ;;  %v1553_v0 = vpop.f32.mrb[15].mxu1 }
 0xf9e   :  { %v1554_v28 = vadd.f32 %v3191_v25, %v1553_v0 }
 0xf9f   :  { %v1563_v46 = vadd.f32 %v1559_v27, %v1374_v14 }
 0xfa0   :  { %v1562_v63 = vadd.f32 %v1554_v28, %v1373_v12 }
 0xfa1   :  { %v1569_v29 = vsel %vm145_vm4, %v1563_v46, 0.0 }
 0xfa2   :  { %1570 = vadd.xlane.f32.xlu0 %v1569_v29  ;;  %v1566_v44 = vsel %vm145_vm4, %v1562_v63, 0.0 }
 0xfa3   :  { %1567 = vadd.xlane.f32.xlu1 %v1566_v44 }
0x102f   :  { %v1571_v30 = vpop.xlane.xlu0 %1570 }
0x1030   :  { %v1573_v31 = vmul.f32 0.03125, %v1571_v30  ;;  %v1568_v32 = vpop.xlane.xlu1 %1567 }
0x1031   :  { %v1572_v33 = vmul.f32 0.03125, %v1568_v32 }
0x1032   :  { %v1575_v34 = vsub.f32 %v1563_v46, %v1573_v31 }
0x1033   :  { %v1574_v35 = vsub.f32 %v1562_v63, %v1572_v33 }
0x1034   :  { %v1577_v36 = vmul.f32 %v1575_v34, %v1575_v34 }
0x1035   :  { %v1576_v37 = vmul.f32 %v1574_v35, %v1574_v35 }
0x1036   :  { %v1581_v38 = vsel %vm145_vm4, %v1577_v36, 0.0 }
0x1037   :  { %1582 = vadd.xlane.f32.xlu0 %v1581_v38  ;;  %v1578_v39 = vsel %vm145_vm4, %v1576_v37, 0.0 }
0x1038   :  { %1579 = vadd.xlane.f32.xlu1 %v1578_v39 }
0x10c4   :  { %v1583_v49 = vpop.xlane.xlu0 %1582 }
0x10c5   :  { %v1585_v50 = vmul.f32 0.03125, %v1583_v49  ;;  %v1580_v52 = vpop.xlane.xlu1 %1579 }
0x10c6   :  { %v1584_v53 = vmul.f32 0.03125, %v1580_v52 }
0x10c7   :  { %v1587_v54 = vadd.f32 1e-05, %v1585_v50 }
0x10c8   :  { %v1586_v55 = vadd.f32 1e-05, %v1584_v53 }
0x10c9   :  { %3996 = vrsqrt.f32 %v1587_v54 }
0x10ca   :  { %3998 = vrsqrt.f32 %v1586_v55 }
0x10d3   :  { %v3997_v56 = vpop.eup %3996 }
0x10d4   :  { %v3999_v58 = vpop.eup %3998  ;;  %v1591_v61 = vmul.f32 %v3997_v56, %v1575_v34 }
0x10d5   :  { %v1590_v62 = vmul.f32 %v3999_v58, %v1574_v35 }
0x10d6   :  { %v1597_v2 = vmul.f32 %v3194_v57, %v1591_v61 }
0x10d7   :  { %v1596_v4 = vmul.f32 %v3194_v57, %v1590_v62 }
0x10d8   :  { %v4316_v5 = vadd.f32 %v3195_v3, %v1597_v2 }
0x10d9   :  { %v4314_v1 = vadd.f32 %v3195_v3, %v1596_v4 }
0x10db   :  { %3537 = vmatprep.mubr.msk.f32.mxu0 %vm145_vm4, %v4314_v1 }
0x10dc   :  { %3538 = vmatmul.mubr.msk.f32.vlgmr.msra.gmra.mrb[14].mxu0 %vm145_vm4, %v4316_v5 }
0x11af   :  { %v3539_v47 = vpop.f32.mrb[14].mxu0 }
0x11b0   :  { %v4322_v7 = vadd.f32 %v3539_v47, %v3196_v6  ;;  %v1685_v8 = vpop.f32.mrb[15].mxu0 }
0x11b1   :  { %v4324_v9 = vadd.f32 %v3196_v6, %v1685_v8 }
0x11b3   :  { %3544 = vmatprep.mubr.msk.f32.mxu0 %vm417_vm5, %v4324_v9  ;;  %v4330_v10 = vpack.i.bf16 %v4322_v7, %v4324_v9 }
0x11b5   :  { %3926 = vrot.lane.b32.xlu0 %v4330_v10, %s4101_s7  ;;  %3921 = vrot.lane.b32.xlu1 %v4330_v10, %s4100_s6 }
0x11b9   :  { %1892 = vrot.lane.b32.xlu1 %v4324_v9, %s4099_s1 }
0x11bd   :  { %1894 = vrot.lane.b32.xlu1 %v4322_v7, %s4099_s1 }
0x1227   :  { %v3927_v11 = vpop.permute.xlu0 %3926  ;;  %v3922_v12 = vpop.permute.xlu1 %3921 }
0x1228   :  { %v3929_v13 = vunpack.i.h.bf16 %v3927_v11  ;;  %v3928_v14 = vunpack.i.l.bf16 %v3927_v11  ;;  %v3924_v15 = vunpack.i.h.bf16 %v3922_v12  ;;  %v3923_v16 = vunpack.i.l.bf16 %v3922_v12 }
0x122a   :  { %v3772_v17 = vpack.c.bf16 %v3924_v15, %v3923_v16  ;;  %v3782_v18 = vpack.c.bf16 %v3929_v13, %v3928_v14 }
0x122b   :  { %v1893_v19 = vpop.permute.xlu1 %1892 }
0x122c   :  { %3774 = vmatprep.subr.msk.bf16.mxu0 %vm4190_vm6, %v3772_v17 }
0x122d   :  { %3777 = vmatpush3.bf16.xpose.msk.msra.mxu0 %vm4190_vm6, %v3772_v17 }
0x122e   :  { %3784 = vmatprep.subr.msk.bf16.mxu0 %vm4190_vm6, %v3782_v18 }
0x122f   :  { %v1895_v20 = vpop.permute.xlu1 %1894 }
0x1234   :  { %3545 = vmatmul.mubr.msk.f32.vlgmr.msra.gmra.mrb[16].mxu0 %vm417_vm5, %v4322_v7 }
0x1235   :  { %3787 = vmatpush3.bf16.xpose.msk.msra.mxu0 %vm4190_vm6, %v3782_v18  ;;  %3558 = vmatprep.mubr.msk.f32.mxu0 %vm417_vm5, %v1893_v19 }
0x123c   :  { %3559 = vmatmul.mubr.msk.f32.vlgmr.msra.gmra.mrb[18].mxu0 %vm417_vm5, %v1895_v20 }
0x1307   :  { %v3546_v21 = vpop.f32.mrb[16].mxu0 }
0x1308   :  { %v1780_v22 = vadd.f32 %v3546_v21, %v4206_v59  ;;  %v1774_v23 = vpop.f32.mrb[17].mxu0 }
0x1309   :  { %v1775_v24 = vadd.f32 %v1774_v23, %v4208_v60 }
0x130a   :  { %v1786_v25 = vsel %vm501_vm7, %v1780_v22, -inf }
0x130b   :  { %1787 = vmax.xlane.f32.xlu1 %v1786_v25  ;;  %v1783_v26 = vsel %vm501_vm7, %v1775_v24, -inf }
0x130c   :  { %1784 = vmax.xlane.f32.xlu0 %v1783_v26 }
0x130f   :  { %v3560_v27 = vpop.f32.mrb[18].mxu0 }
0x1310   :  { %v1974_v0 = vpop.f32.mrb[19].mxu0  ;;  %v1980_v46 = vadd.f32 %v3560_v27, %v4206_v59 }
0x1311   :  { %v1975_v28 = vadd.f32 %v1974_v0, %v4208_v60 }
0x1312   :  { %v1986_v29 = vsel %vm501_vm7, %v1980_v46, -inf }
0x1313   :  { %v1983_v63 = vsel %vm501_vm7, %v1975_v28, -inf }
0x1314   :  { %1984 = vmax.xlane.f32.xlu0 %v1983_v63 }
0x1318   :  { %1987 = vmax.xlane.f32.xlu0 %v1986_v29 }
0x131c   :  { %3931 = vrot.lane.b32.xlu1 %v4330_v10, %s4102_s8 }
0x1398   :  { %v1788_v44 = vpop.xlane.xlu1 %1787 }
0x1399   :  { %v1790_v30 = vsub.f32 %v1780_v22, %v1788_v44  ;;  %v1785_v31 = vpop.xlane.xlu0 %1784 }
0x139a   :  { %v1789_v32 = vsub.f32 %v1775_v24, %v1785_v31 }
0x139b   :  { %v1793_v33 = vmul.f32 1.442695, %v1790_v30 }
0x139c   :  { %v1791_v34 = vmul.f32 1.442695, %v1789_v32  ;;  %v3932_v35 = vpop.permute.xlu1 %3931 }
0x139d   :  { %4000 = vpow2.f32 %v1793_v33  ;;  %v3934_v36 = vunpack.i.h.bf16 %v3932_v35  ;;  %v3933_v37 = vunpack.i.l.bf16 %v3932_v35 }
0x139e   :  { %4002 = vpow2.f32 %v1791_v34 }
0x139f   :  { %v3778_v38 = vpack.c.bf16 %v3934_v36, %v3933_v37 }
0x13a1   :  { %3779 = vmatprep.subr.bf16.mxu1 %v3778_v38  ;;  %v1985_v39 = vpop.xlane.xlu0 %1984 }
0x13a2   :  { %3781 = vmatpush3.bf16.msra.mxu1 %v3778_v38  ;;  %v1989_v53 = vsub.f32 %v1975_v28, %v1985_v39 }
0x13a4   :  { %v1991_v54 = vmul.f32 1.442695, %v1989_v53 }
0x13a5   :  { %v1988_v41 = vpop.xlane.xlu0 %1987 }
0x13a6   :  { %v1990_v40 = vsub.f32 %v1980_v46, %v1988_v41 }
0x13a7   :  { %v4001_v42 = vpop.eup %4000 }
0x13a8   :  { %v4003_v43 = vpop.eup %4002  ;;  %v1993_v45 = vmul.f32 1.442695, %v1990_v40  ;;  %v1798_v48 = vsel %vm501_vm7, %v4001_v42, 0.0 }
0x13a9   :  { %1799 = vadd.xlane.f32.xlu0 %v1798_v48  ;;  %v1795_v49 = vsel %vm501_vm7, %v4003_v43, 0.0 }
0x13aa   :  { %4004 = vpow2.f32 %v1993_v45  ;;  %1796 = vadd.xlane.f32.xlu1 %v1795_v49 }
0x13ab   :  { %4006 = vpow2.f32 %v1991_v54 }
0x13b4   :  { %v4005_v50 = vpop.eup %4004 }
0x13b5   :  { %v1998_v52 = vsel %vm501_vm7, %v4005_v50, 0.0  ;;  %v4007_v55 = vpop.eup %4006 }
0x13b6   :  { %1999 = vadd.xlane.f32.xlu0 %v1998_v52  ;;  %v1995_v56 = vsel %vm501_vm7, %v4007_v55, 0.0 }
0x13bb   :  { %3941 = vrot.lane.b32.xlu1 %v4330_v10, %s4103_s9 }
0x13cc   :  { %3936 = vrot.lane.b32.xlu0 %v4330_v10, %s4104_s10 }
0x13d0   :  { %2094 = vrot.lane.b32.xlu0 %v4322_v7, %s4105_s11 }
0x13df   :  { %1996 = vadd.xlane.f32.xlu1 %v1995_v56 }
0x13f0   :  { %2092 = vrot.lane.b32.xlu1 %v4324_v9, %s4105_s11 }
0x1436   :  { %v1800_v57 = vpop.xlane.xlu0 %1799 }
0x1437   :  { %4008 = vrcp.f32 %v1800_v57  ;;  %v1797_v58 = vpop.xlane.xlu1 %1796 }
0x1438   :  { %4010 = vrcp.f32 %v1797_v58  ;;  %v4044_v58 = vld [vmem:[#allocation4 + $0x270] sm:$0xff] }
0x143b   :  { %v3942_v6 = vpop.permute.xlu1 %3941 }
0x143c   :  { %v3944_v8 = vunpack.i.h.bf16 %v3942_v6  ;;  %v3943_v11 = vunpack.i.l.bf16 %v3942_v6 }
0x143e   :  { %v3792_v15 = vpack.c.bf16 %v3944_v8, %v3943_v11 }
0x1441   :  { %v4009_v61 = vpop.eup %4008 }
0x1442   :  { %v4011_v62 = vpop.eup %4010  ;;  %v1804_v4 = vmul.f32 %v4009_v61, %v4001_v42 }
0x1443   :  { %v2000_v3 = vpop.xlane.xlu0 %1999  ;;  %v1803_v2 = vmul.f32 %v4011_v62, %v4003_v43 }
0x1444   :  { %4012 = vrcp.f32 %v2000_v3  ;;  %v4045_v3 = vld [vmem:[#allocation4 + $0x268] sm:$0xff] }
0x1445   :  { %3551 = vmatprep.mubr.msk.f32.mxu1 %vm501_vm7, %v1803_v2 }
0x1446   :  { %3552 = vmatmul.mubr.msk.f32.vlgmr.msra.gmra.mrb[16].mxu1 %vm501_vm7, %v1804_v4 }
0x1447   :  { %v3937_v47 = vpop.permute.xlu0 %3936 }
0x1448   :  { %v3939_v12 = vunpack.i.h.bf16 %v3937_v47  ;;  %v3938_v13 = vunpack.i.l.bf16 %v3937_v47 }
0x144a   :  { %v3788_v14 = vpack.c.bf16 %v3939_v12, %v3938_v13 }
0x144b   :  { %v2095_v22 = vpop.permute.xlu0 %2094 }
0x144c   :  { %3789 = vmatprep.subr.bf16.mxu1 %v3788_v14 }
0x144d   :  { %3791 = vmatpush3.bf16.msra.mxu1 %v3788_v14 }
0x144e   :  { %3794 = vmatprep.subr.msk.bf16.mxu1 %vm4190_vm6, %v3792_v15  ;;  %v4013_v17 = vpop.eup %4012 }
0x144f   :  { %v2004_v20 = vmul.f32 %v4013_v17, %v4005_v50 }
0x146c   :  { %v1997_v16 = vpop.xlane.xlu1 %1996 }
0x146d   :  { %4014 = vrcp.f32 %v1997_v16 }
0x1470   :  { %v2093_v21 = vpop.permute.xlu1 %2092 }
0x1477   :  { %v4015_v18 = vpop.eup %4014 }
0x1478   :  { %v2003_v19 = vmul.f32 %v4015_v18, %v4007_v55 }
0x147a   :  { %3565 = vmatprep.mubr.msk.f32.mxu1 %vm501_vm7, %v2003_v19 }
0x147b   :  { %3566 = vmatmul.mubr.msk.f32.vlgmr.msra.gmra.mrb[18].mxu1 %vm501_vm7, %v2004_v20 }
0x147c   :  { %3797 = vmatpush3.bf16.xpose.msk.msra.mxu1 %vm4190_vm6, %v3792_v15  ;;  %3572 = vmatprep.mubr.msk.f32.mxu1 %vm417_vm5, %v2093_v21 }
0x1483   :  { %3573 = vmatmul.mubr.msk.f32.vlgmr.msra.gmra.mrb[20].mxu1 %vm417_vm5, %v2095_v22 }
0x1519   :  { %v4384_v23 = vpop.f32.mrb[16].mxu1 }
0x151a   :  { %v4386_v24 = vpop.f32.mrb[17].mxu1 }
0x154e   :  { %v4388_v25 = vpop.f32.mrb[18].mxu1 }
0x154f   :  { %v4390_v26 = vpop.f32.mrb[19].mxu1 }
0x1556   :  { %v3574_v27 = vpop.f32.mrb[20].mxu1 }
0x1557   :  { %v2180_v0 = vadd.f32 %v3574_v27, %v4206_v59  ;;  %v2174_v28 = vpop.f32.mrb[21].mxu1 }
0x1558   :  { %v2175_v46 = vadd.f32 %v2174_v28, %v4208_v60 }
0x1559   :  { %v2186_v63 = vsel %vm501_vm7, %v2180_v0, -inf }
0x155a   :  { %2187 = vmax.xlane.f32.xlu0 %v2186_v63  ;;  %v2183_v29 = vsel %vm501_vm7, %v2175_v46, -inf  ;;  %v2524_v63 = vld [vmem:[#allocation4 + $0x180] sm:$0xff] }
0x155b   :  { %2184 = vmax.xlane.f32.xlu1 %v2183_v29 }
0x15e7   :  { %v2188_v44 = vpop.xlane.xlu0 %2187 }
0x15e8   :  { %v2190_v30 = vsub.f32 %v2180_v0, %v2188_v44  ;;  %v2185_v31 = vpop.xlane.xlu1 %2184  ;;  %v2525_v44 = vld [vmem:[#allocation4 + $0x188] sm:$0xff] }
0x15e9   :  { %v2189_v32 = vsub.f32 %v2175_v46, %v2185_v31  ;;  %v2523_v46 = vld [vmem:[#allocation4 + $0x178] sm:$0xff] }
0x15ea   :  { %v2193_v33 = vmul.f32 1.442695, %v2190_v30  ;;  %v3816_v30 = vpack.c.bf16 %v2525_v44, %v2524_v63 }
0x15eb   :  { %v2191_v34 = vmul.f32 1.442695, %v2189_v32 }
0x15ec   :  { %4016 = vpow2.f32 %v2193_v33 }
0x15ed   :  { %4018 = vpow2.f32 %v2191_v34 }
0x15f6   :  { %v4017_v35 = vpop.eup %4016 }
0x15f7   :  { %v4019_v36 = vpop.eup %4018  ;;  %v2198_v59 = vsel %vm501_vm7, %v4017_v35, 0.0 }
0x15f8   :  { %2199 = vadd.xlane.f32.xlu1 %v2198_v59  ;;  %v2195_v60 = vsel %vm501_vm7, %v4019_v36, 0.0 }
0x15f9   :  { %2196 = vadd.xlane.f32.xlu0 %v2195_v60 }
0x1609   :  { %3951 = vrot.lane.b32.xlu1 %v4330_v10, %s4106_s12 }
0x160d   :  { %2292 = vrot.lane.b32.xlu1 %v4324_v9, %s4107_s13 }
0x160f   :  { %3946 = vrot.lane.b32.xlu0 %v4330_v10, %s4108_s14 }
0x1613   :  { %2294 = vrot.lane.b32.xlu0 %v4322_v7, %s4107_s13 }
0x1685   :  { %v2200_v37 = vpop.xlane.xlu1 %2199 }
0x1686   :  { %4020 = vrcp.f32 %v2200_v37  ;;  %v2197_v38 = vpop.xlane.xlu0 %2196 }
0x1687   :  { %4022 = vrcp.f32 %v2197_v38 }
0x1689   :  { %v3952_v39 = vpop.permute.xlu1 %3951 }
0x168a   :  { %v3947_v41 = vpop.permute.xlu0 %3946  ;;  %v3954_v40 = vunpack.i.h.bf16 %v3952_v39  ;;  %v3953_v42 = vunpack.i.l.bf16 %v3952_v39 }
0x168b   :  { %v3949_v43 = vunpack.i.h.bf16 %v3947_v41  ;;  %v3948_v45 = vunpack.i.l.bf16 %v3947_v41 }
0x168c   :  { %v3802_v49 = vpack.c.bf16 %v3954_v40, %v3953_v42 }
0x168d   :  { %v3798_v48 = vpack.c.bf16 %v3949_v43, %v3948_v45  ;;  %v2293_v53 = vpop.permute.xlu1 %2292  ;;  %v3223_v43 = vld [vmem:[#allocation4 + $0x190] ss:$0 sm:$0xff] }
0x168e   :  { %v2295_v54 = vpop.permute.xlu0 %2294 }
0x168f   :  { %3799 = vmatprep.subr.bf16.mxu0 %v3798_v48 }
0x1690   :  { %v4021_v9 = vpop.eup %4020  ;;  %3801 = vmatpush3.bf16.msra.mxu0 %v3798_v48 }
0x1691   :  { %v4023_v50 = vpop.eup %4022  ;;  %3804 = vmatprep.subr.msk.bf16.mxu0 %vm4190_vm6, %v3802_v49  ;;  %v2204_v52 = vmul.f32 %v4021_v9, %v4017_v35 }
0x1692   :  { %v2203_v7 = vmul.f32 %v4023_v50, %v4019_v36 }
0x1694   :  { %3579 = vmatprep.mubr.msk.f32.mxu0 %vm501_vm7, %v2203_v7 }
0x1695   :  { %3580 = vmatmul.mubr.msk.f32.vlgmr.msra.gmra.mrb[20].mxu0 %vm501_vm7, %v2204_v52 }
0x1696   :  { %3586 = vmatprep.mubr.msk.f32.mxu0 %vm417_vm5, %v2293_v53 }
0x1699   :  { %3807 = vmatpush3.bf16.xpose.msk.msra.mxu0 %vm4190_vm6, %v3802_v49 }
0x16a0   :  { %3587 = vmatmul.mubr.msk.f32.vlgmr.msra.gmra.mrb[22].mxu0 %vm417_vm5, %v2295_v54 }
0x1768   :  { %v3581_v55 = vpop.f32.mrb[20].mxu0 }
0x1769   :  { %v2283_v56 = vpop.f32.mrb[21].mxu0 }
0x1773   :  { %v3588_v57 = vpop.f32.mrb[22].mxu0 }
0x1774   :  { %v2380_v61 = vadd.f32 %v4044_v58, %v3588_v57  ;;  %v2374_v62 = vpop.f32.mrb[23].mxu0 }
0x1775   :  { %v2375_v2 = vadd.f32 %v4045_v3, %v2374_v62  ;;  %v2655_v3 = vld [vmem:[#allocation4 + $0x1b0] sm:$0xff] }
0x1776   :  { %v2386_v4 = vsel %vm501_vm7, %v2380_v61, -inf }
0x1777   :  { %2387 = vmax.xlane.f32.xlu0 %v2386_v4  ;;  %v2383_v6 = vsel %vm501_vm7, %v2375_v2, -inf  ;;  %v2656_v4 = vld [vmem:[#allocation4 + $0x1b8] sm:$0xff] }
0x1778   :  { %2384 = vmax.xlane.f32.xlu1 %v2383_v6  ;;  %v2657_v6 = vld [vmem:[#allocation4 + $0x1c0] sm:$0xff] }
0x1804   :  { %v2388_v47 = vpop.xlane.xlu0 %2387 }
0x1805   :  { %v2390_v51 = vsub.f32 %v2380_v61, %v2388_v47  ;;  %v2385_v8 = vpop.xlane.xlu1 %2384  ;;  %v3824_v47 = vpack.c.bf16 %v2657_v6, %v2656_v4 }
0x1806   :  { %v2389_v11 = vsub.f32 %v2375_v2, %v2385_v8  ;;  %v2747_v8 = vld [vmem:[#allocation4 + $0x1d8] sm:$0xff] }
0x1807   :  { %v2393_v12 = vmul.f32 1.442695, %v2390_v51  ;;  %v2746_v51 = vld [vmem:[#allocation4 + $0x1d0] sm:$0xff] }
0x1808   :  { %v2391_v13 = vmul.f32 1.442695, %v2389_v11  ;;  %v2748_v11 = vld [vmem:[#allocation4 + $0x1e0] sm:$0xff] }
0x1809   :  { %4024 = vpow2.f32 %v2393_v12  ;;  %v3828_v12 = vpack.c.bf16 %v2747_v8, %v2746_v51 }
0x180a   :  { %4026 = vpow2.f32 %v2391_v13  ;;  %v2749_v13 = vld [vmem:[#allocation4 + $0x1e8] sm:$0xff] }
0x1813   :  { %v4025_v14 = vpop.eup %4024 }
0x1814   :  { %v4027_v15 = vpop.eup %4026  ;;  %v2398_v16 = vsel %vm501_vm7, %v4025_v14, 0.0 }
0x1815   :  { %2399 = vadd.xlane.f32.xlu1 %v2398_v16  ;;  %v2395_v17 = vsel %vm501_vm7, %v4027_v15, 0.0  ;;  %v2751_v16 = vld [vmem:[#allocation4 + $0x1f8] sm:$0xff] }
0x1816   :  { %2396 = vadd.xlane.f32.xlu0 %v2395_v17 }
0x1826   :  { %2494 = vrot.lane.b32.xlu1 %v4390_v26, %s4096_s20 }
0x182a   :  { %2496 = vrot.lane.b32.xlu1 %v4388_v25, %s4096_s20 }
0x182c   :  { %3956 = vrot.lane.b32.xlu0 %v4330_v10, %s4109_s15  ;;  %v2522_v10 = vld [vmem:[#allocation4 + $0x170] sm:$0xff] }
0x182d   :  { %v3812_v29 = vpack.c.bf16 %v2523_v46, %v2522_v10 }
0x182e   :  { %2504 = vrot.lane.b32.xlu1 %v3581_v55, %s4110_s16 }
0x1830   :  { %2502 = vrot.lane.b32.xlu0 %v2283_v56, %s4110_s16 }
0x18a2   :  { %v2400_v18 = vpop.xlane.xlu1 %2399 }
0x18a3   :  { %4028 = vrcp.f32 %v2400_v18  ;;  %v2397_v19 = vpop.xlane.xlu0 %2396 }
0x18a4   :  { %4030 = vrcp.f32 %v2397_v19 }
0x18a6   :  { %v2495_v33 = vpop.permute.xlu1 %2494 }
0x18a7   :  { %v3957_v20 = vpop.permute.xlu0 %3956  ;;  %v2516_v59 = vsel %vm417_vm5, %v4386_v24, %v2495_v33 }
0x18a8   :  { %v3959_v21 = vunpack.i.h.bf16 %v3957_v20  ;;  %v3958_v22 = vunpack.i.l.bf16 %v3957_v20 }
0x18aa   :  { %v3808_v27 = vpack.c.bf16 %v3959_v21, %v3958_v22  ;;  %v2497_v34 = vpop.permute.xlu1 %2496 }
0x18ab   :  { %v2503_v36 = vpop.permute.xlu0 %2502  ;;  %v2517_v37 = vsel %vm417_vm5, %v4384_v23, %v2497_v34  ;;  %v3228_v34 = vld [vmem:[#allocation4 + $0x1c8] ss:$0 sm:$0xff] }
0x18ac   :  { %3809 = vmatprep.subr.bf16.mxu1 %v3808_v27  ;;  %v2518_v38 = vsel %vm501_vm7, %v2516_v59, %v2503_v36 }
0x18ad   :  { %v4029_v26 = vpop.eup %4028  ;;  %3811 = vmatpush3.bf16.msra.mxu1 %v3808_v27 }
0x18ae   :  { %v4031_v0 = vpop.eup %4030  ;;  %v2404_v28 = vmul.f32 %v4029_v26, %v4025_v14  ;;  %3813 = vmatprep.subr.bf16.mxu1 %v3812_v29  ;;  %v2505_v35 = vpop.permute.xlu1 %2504  ;;  %v3832_v14 = vpack.c.bf16 %v2749_v13, %v2748_v11 }
0x18af   :  { %v2403_v25 = vmul.f32 %v4031_v0, %v4027_v15  ;;  %v2519_v41 = vsel %vm501_vm7, %v2517_v37, %v2505_v35  ;;  %v2750_v15 = vld [vmem:[#allocation4 + $0x1f0] sm:$0xff]  ;;  %v3226_v0 = vld [vmem:[#allocation4 + $0x198] ss:$0 sm:$0xff] }
0x18b0   :  { %v3836_v17 = vpack.c.bf16 %v2751_v16, %v2750_v15  ;;  %v3235_v16 = vld [vmem:[#allocation4 + $0x220] ss:$0 sm:$0xff] }
0x18b1   :  { %3593 = vmatprep.mubr.msk.f32.mxu1 %vm501_vm7, %v2403_v25 }
0x18b2   :  { %3594 = vmatmul.mubr.msk.f32.vlgmr.msra.gmra.mrb[22].mxu1 %vm501_vm7, %v2404_v28  ;;  %v3227_v28 = vld [vmem:[#allocation4 + $0x1a0] ss:$0 sm:$0xff] }
0x18b3   :  { %3815 = vmatpush3.bf16.msra.mxu1 %v3812_v29 }
0x18b4   :  { %3817 = vmatprep.subr.bf16.mxu1 %v3816_v30 }
0x18b7   :  { %3819 = vmatpush3.bf16.msra.mxu1 %v3816_v30 }
0x18b8   :  { %3829 = vmatprep.subr.bf16.mxu1 %v3828_v12 }
0x1985   :  { %v3595_v31 = vpop.f32.mrb[22].mxu1 }
0x1986   :  { %2512 = vrot.lane.b32.xlu1 %v3595_v31, %s4111_s17  ;;  %v2483_v32 = vpop.f32.mrb[23].mxu1  ;;  %v2752_v31 = vld [vmem:[#allocation4 + $0x200] sm:$0xff] }
0x1987   :  { %2510 = vrot.lane.b32.xlu0 %v2483_v32, %s4111_s17  ;;  %v2753_v32 = vld [vmem:[#allocation4 + $0x208] sm:$0xff] }
0x1988   :  { %v3840_v33 = vpack.c.bf16 %v2753_v32, %v2752_v31 }
0x19f8   :  { %v2513_v60 = vpop.permute.xlu1 %2512 }
0x19f9   :  { %v2511_v39 = vpop.permute.xlu0 %2510  ;;  %v2521_v42 = vsel %vm1239_vm8, %v2519_v41, %v2513_v60 }
0x19fa   :  { %v2520_v40 = vsel %vm1239_vm8, %v2518_v38, %v2511_v39  ;;  %v3231_v39 = vld [vmem:[#allocation4 + $0x210] ss:$0 sm:$0xff] }
0x19fb   :  { %3604 = vmatprep.mubr.msk.f32.mxu1 %vm145_vm4, %v2520_v40 }
0x19fc   :  { %3605 = vmatmul.mubr.msk.f32.vlgmr.msra.gmra.mrb[24].mxu1 %vm145_vm4, %v2521_v42 }
0x19fd   :  { %3831 = vmatpush3.bf16.msra.mxu1 %v3828_v12  ;;  %v3234_v12 = vld [vmem:[#allocation4 + $0x218] ss:$0 sm:$0xff] }
0x19fe   :  { %3833 = vmatprep.subr.bf16.mxu1 %v3832_v14 }
0x1a01   :  { %3835 = vmatpush3.bf16.msra.mxu1 %v3832_v14 }
0x1a02   :  { %3837 = vmatprep.subr.bf16.mxu1 %v3836_v17 }
0x1a05   :  { %3839 = vmatpush3.bf16.msra.mxu1 %v3836_v17 }
0x1a06   :  { %3841 = vmatprep.subr.bf16.mxu1 %v3840_v33 }
0x1a09   :  { %3843 = vmatpush3.bf16.msra.mxu1 %v3840_v33 }
0x1acf   :  { %v3606_v45 = vpop.f32.mrb[24].mxu1 }
0x1ad0   :  { %v2609_v24 = vadd.f32 %v3606_v45, %v3223_v43  ;;  %v2603_v48 = vpop.f32.mrb[25].mxu1 }
0x1ad1   :  { %v2604_v49 = vadd.f32 %v3223_v43, %v2603_v48 }
0x1ad2   :  { %v2613_v23 = vadd.f32 %v2609_v24, %v4316_v5 }
0x1ad3   :  { %v2612_v9 = vadd.f32 %v2604_v49, %v4314_v1  ;;  %v2654_v1 = vld [vmem:[#allocation4 + $0x1a8] sm:$0xff] }
0x1ad4   :  { %v2619_v50 = vsel %vm145_vm4, %v2613_v23, 0.0  ;;  %v3820_v2 = vpack.c.bf16 %v2655_v3, %v2654_v1  ;;  %v2885_v1 = vld [vmem:[#allocation4 + $0x240] sm:$0xff] }
0x1ad5   :  { %2620 = vadd.xlane.f32.xlu1 %v2619_v50  ;;  %v2616_v7 = vsel %vm145_vm4, %v2612_v9, 0.0 }
0x1ad6   :  { %2617 = vadd.xlane.f32.xlu0 %v2616_v7  ;;  %3821 = vmatprep.subr.bf16.mxu0 %v3820_v2 }
0x1ad7   :  { %3823 = vmatpush3.bf16.msra.mxu0 %v3820_v2 }
0x1ad8   :  { %3825 = vmatprep.subr.bf16.mxu0 %v3824_v47 }
0x1adb   :  { %3827 = vmatpush3.bf16.msra.mxu0 %v3824_v47 }
0x1b62   :  { %v2621_v52 = vpop.xlane.xlu1 %2620 }
0x1b63   :  { %v2623_v53 = vmul.f32 0.03125, %v2621_v52  ;;  %v2618_v54 = vpop.xlane.xlu0 %2617 }
0x1b64   :  { %v2622_v55 = vmul.f32 0.03125, %v2618_v54 }
0x1b65   :  { %v2625_v56 = vsub.f32 %v2613_v23, %v2623_v53 }
0x1b66   :  { %v2624_v57 = vsub.f32 %v2612_v9, %v2622_v55 }
0x1b67   :  { %v2627_v62 = vmul.f32 %v2625_v56, %v2625_v56 }
0x1b68   :  { %v2626_v58 = vmul.f32 %v2624_v57, %v2624_v57 }
0x1b69   :  { %v2631_v5 = vsel %vm145_vm4, %v2627_v62, 0.0 }
0x1b6a   :  { %v2628_v61 = vsel %vm145_vm4, %v2626_v58, 0.0  ;;  %v2882_v58 = vld [vmem:[#allocation4 + $0x228] sm:$0xff] }
0x1b6b   :  { %2629 = vadd.xlane.f32.xlu0 %v2628_v61  ;;  %v2883_v61 = vld [vmem:[#allocation4 + $0x230] sm:$0xff] }
0x1b6c   :  { %v3844_v62 = vpack.c.bf16 %v2883_v61, %v2882_v58 }
0x1b6e   :  { %3845 = vmatprep.subr.bf16.mxu0 %v3844_v62 }
0x1b6f   :  { %2632 = vadd.xlane.f32.xlu0 %v2631_v5  ;;  %v2884_v5 = vld [vmem:[#allocation4 + $0x238] sm:$0xff] }
0x1b70   :  { %v3848_v3 = vpack.c.bf16 %v2885_v1, %v2884_v5 }
0x1bf8   :  { %v2630_v18 = vpop.xlane.xlu0 %2629 }
0x1bf9   :  { %v2634_v19 = vmul.f32 0.03125, %v2630_v18 }
0x1bfb   :  { %v2636_v20 = vadd.f32 1e-05, %v2634_v19 }
0x1bfc   :  { %v2633_v21 = vpop.xlane.xlu0 %2632 }
0x1bfd   :  { %4032 = vrsqrt.f32 %v2636_v20  ;;  %v2635_v22 = vmul.f32 0.03125, %v2633_v21  ;;  %v2974_v21 = vld [vmem:[#allocation4 + $0x250] sm:$0xff] }
0x1bff   :  { %v2637_v27 = vadd.f32 1e-05, %v2635_v22  ;;  %v2975_v22 = vld [vmem:[#allocation4 + $0x258] sm:$0xff] }
0x1c01   :  { %4034 = vrsqrt.f32 %v2637_v27  ;;  %v3852_v27 = vpack.c.bf16 %v2975_v22, %v2974_v21 }
0x1c07   :  { %v4033_v26 = vpop.eup %4032 }
0x1c08   :  { %v2640_v25 = vmul.f32 %v4033_v26, %v2624_v57  ;;  %v3236_v26 = vld [vmem:[#allocation4 + $0x248] ss:$0 sm:$0xff] }
0x1c0a   :  { %v2646_v10 = vmul.f32 %v3226_v0, %v2640_v25 }
0x1c0b   :  { %v4035_v46 = vpop.eup %4034 }
0x1c0c   :  { %v2641_v63 = vmul.f32 %v4035_v46, %v2625_v56  ;;  %v2652_v29 = vadd.f32 %v3227_v28, %v2646_v10 }
0x1c0e   :  { %v2647_v44 = vmul.f32 %v3226_v0, %v2641_v63  ;;  %3615 = vmatprep.mubr.msk.f32.mxu0 %vm145_vm4, %v2652_v29 }
0x1c10   :  { %v2653_v30 = vadd.f32 %v3227_v28, %v2647_v44  ;;  %v4114_v44 = vmov 0.0  }
0x1c12   :  { %3616 = vmatmul.mubr.msk.f32.vlgmr.msra.gmra.mrb[24].mxu0 %vm145_vm4, %v2653_v30 }
0x1c13   :  { %3847 = vmatpush3.bf16.msra.mxu0 %v3844_v62 }
0x1c14   :  { %3849 = vmatprep.subr.bf16.mxu0 %v3848_v3 }
0x1c17   :  { %3851 = vmatpush3.bf16.msra.mxu0 %v3848_v3 }
0x1c18   :  { %3853 = vmatprep.subr.bf16.mxu0 %v3852_v27 }
0x1ce5   :  { %v3617_v35 = vpop.f32.mrb[24].mxu0 }
0x1ce6   :  { %v2741_v36 = vadd.f32 %v3617_v35, %v3228_v34  ;;  %v2735_v59 = vpop.f32.mrb[25].mxu0 }
0x1ce7   :  { %v2736_v60 = vadd.f32 %v3228_v34, %v2735_v59 }
0x1ce8   :  { %v2745_v38 = vmax.f32 %v2741_v36, 0.0 }
0x1ce9   :  { %v2744_v37 = vmax.f32 %v2736_v60, 0.0  ;;  %v3064_v60 = vld [vmem:[#allocation4 + $0x278] sm:$0x3] }
0x1ceb   :  { %3634 = vmatprep.mubr.msk.f32.mxu1 %vm1480_vm9, %v2744_v37 }
0x1cec   :  { %3635 = vmatmul.mubr.msk.f32.vlgmr.msra.gmra.mrb[26].mxu1 %vm1480_vm9, %v2745_v38 }
0x1dbf   :  { %v3636_v41 = vpop.f32.mrb[26].mxu1 }
0x1dc0   :  { %v2837_v40 = vadd.f32 %v3636_v41, %v3231_v39  ;;  %v2831_v42 = vpop.f32.mrb[27].mxu1 }
0x1dc1   :  { %v2832_v43 = vadd.f32 %v3231_v39, %v2831_v42 }
0x1dc2   :  { %v2841_v45 = vadd.f32 %v2837_v40, %v2653_v30  ;;  %v3239_v30 = vld [vmem:[#allocation4 + $0x260] ss:$0 sm:$0xff] }
0x1dc3   :  { %v2840_v24 = vadd.f32 %v2832_v43, %v2652_v29  ;;  %v4112_v29 = vmov 0.0|0.0  }
0x1dc4   :  { %v2847_v48 = vsel %vm145_vm4, %v2841_v45, 0.0 }
0x1dc5   :  { %2848 = vadd.xlane.f32.xlu0 %v2847_v48  ;;  %v2844_v49 = vsel %vm145_vm4, %v2840_v24, 0.0 }
0x1dc6   :  { %2845 = vadd.xlane.f32.xlu1 %v2844_v49 }
0x1e52   :  { %v2849_v23 = vpop.xlane.xlu0 %2848 }
0x1e53   :  { %v2851_v9 = vmul.f32 0.03125, %v2849_v23  ;;  %v2846_v50 = vpop.xlane.xlu1 %2845 }
0x1e54   :  { %v2850_v7 = vmul.f32 0.03125, %v2846_v50 }
0x1e55   :  { %v2853_v52 = vsub.f32 %v2841_v45, %v2851_v9 }
0x1e56   :  { %v2852_v53 = vsub.f32 %v2840_v24, %v2850_v7 }
0x1e57   :  { %v2855_v54 = vmul.f32 %v2853_v52, %v2853_v52 }
0x1e58   :  { %v2854_v55 = vmul.f32 %v2852_v53, %v2852_v53 }
0x1e59   :  { %v2859_v56 = vsel %vm145_vm4, %v2855_v54, 0.0 }
0x1e5a   :  { %2860 = vadd.xlane.f32.xlu0 %v2859_v56  ;;  %v2856_v57 = vsel %vm145_vm4, %v2854_v55, 0.0 }
0x1e5b   :  { %2857 = vadd.xlane.f32.xlu1 %v2856_v57 }
0x1ee7   :  { %v2861_v2 = vpop.xlane.xlu0 %2860 }
0x1ee8   :  { %v2863_v4 = vmul.f32 0.03125, %v2861_v2  ;;  %v2858_v6 = vpop.xlane.xlu1 %2857 }
0x1ee9   :  { %v2862_v47 = vmul.f32 0.03125, %v2858_v6 }
0x1eea   :  { %v2865_v51 = vadd.f32 1e-05, %v2863_v4 }
0x1eeb   :  { %v2864_v8 = vadd.f32 1e-05, %v2862_v47 }
0x1eec   :  { %4036 = vrsqrt.f32 %v2865_v51 }
0x1eed   :  { %4038 = vrsqrt.f32 %v2864_v8 }
0x1ef6   :  { %v4037_v11 = vpop.eup %4036 }
0x1ef7   :  { %v4039_v13 = vpop.eup %4038  ;;  %v2869_v14 = vmul.f32 %v4037_v11, %v2853_v52 }
0x1ef8   :  { %v2868_v15 = vmul.f32 %v4039_v13, %v2852_v53 }
0x1ef9   :  { %v2875_v17 = vmul.f32 %v3234_v12, %v2869_v14 }
0x1efa   :  { %v2874_v18 = vmul.f32 %v3234_v12, %v2868_v15 }
0x1efb   :  { %v2881_v20 = vadd.f32 %v3235_v16, %v2875_v17 }
0x1efc   :  { %v2880_v19 = vadd.f32 %v3235_v16, %v2874_v18 }
0x1efe   :  { %3645 = vmatprep.mubr.msk.f32.mxu0 %vm145_vm4, %v2880_v19 }
0x1eff   :  { %3646 = vmatmul.mubr.msk.f32.vlgmr.msra.gmra.mrb[26].mxu0 %vm145_vm4, %v2881_v20 }
0x1f00   :  { %3855 = vmatpush3.bf16.msra.mxu0 %v3852_v27 }
0x1f01   :  { %3856 = vmatprep.subr.bf16.mxu0 %v4112_v29 }
0x1fd2   :  { %v3647_v0 = vpop.f32.mrb[26].mxu0 }
0x1fd3   :  { %v2969_v25 = vadd.f32 %v3647_v0, %v3236_v26  ;;  %v2963_v28 = vpop.f32.mrb[27].mxu0 }
0x1fd4   :  { %v2964_v10 = vadd.f32 %v3236_v26, %v2963_v28 }
0x1fd5   :  { %v2973_v63 = vmax.f32 %v2969_v25, 0.0 }
0x1fd6   :  { %v2972_v46 = vmax.f32 %v2964_v10, 0.0 }
0x1fd8   :  { %3652 = vmatprep.mubr.msk.f32.mxu0 %vm501_vm7, %v2972_v46 }
0x1fd9   :  { %3653 = vmatmul.mubr.msk.f32.vlgmr.msra.gmra.mrb[28].mxu0 %vm501_vm7, %v2973_v63 }
0x1fda   :  { %3659 = vmatprep.mubr.msk.f32.mxu0 %vm4113_vm10, %v4114_v44 }
0x20ac   :  { %v3654_v31 = vpop.f32.mrb[28].mxu0 }
0x20ad   :  { %v3059_v32 = vadd.f32 %v3654_v31, %v3239_v30  ;;  %v3053_v33 = vpop.f32.mrb[29].mxu0 }
0x20ae   :  { %v3054_v34 = vadd.f32 %v3239_v30, %v3053_v33 }
0x20af   :  { %4040 = vtanh.f32 %v3059_v32 }
0x20b0   :  { %4042 = vtanh.f32 %v3054_v34 }
0x20b9   :  { %v4041_v35 = vpop.eup %4040 }
0x20ba   :  { %v4043_v36 = vpop.eup %4042 }
0x20bb   :  { %v3857_v59 = vpack.c.bf16 %v4041_v35, %v4043_v36 }
0x20bd   :  { %3858 = vmatpush3.bf16.msra.mxu0 %v3857_v59 }
0x20c0   :  { %3660 = vmatmul.mubr.msk.f32.vlgmr.msra.gmra.mrb[30].mxu0 %vm501_vm7, %v3064_v60 }
0x2193   :  { %v3134_v37 = vpop.f32.mrb[30].mxu0 }
0x2194   :  { %3139 = vst.msk [vmem:[%s4464_s2] sm:$0x3] %vm3138_vm11, %v3134_v37  ;;  %v3661_v38 = vpop.f32.mrb[31].mxu0 }
0x2195   :  { %3144 = vsyncpa [#allocation3], 1 }
0x2196   :  { %3145 = vsyncpa [#allocation5], 1 }

</bundles_post_ra>
